<compile_context>
chip_gen: v6e
topology: v6e:2x2x1
jax: 0.10.0
libtpu: 0.0.40
codegen_flags: <defaults>
</compile_context>

<pallas_src>
import functools

import jax
import jax.numpy as jnp
from jax.experimental import pallas as pl
from jax.experimental.pallas import tpu as pltpu

BN_EPS = 1e-5

_PARALLEL = pltpu.CompilerParams(dimension_semantics=("parallel",))
_SINGLE = pltpu.CompilerParams(dimension_semantics=("arbitrary",))


def _round_up(v, m):
    return ((v + m - 1) // m) * m


def _to_matmul_weight(w_oihw):
    # (Cout, Cin, 3, 3) -> (Cout, 9*Cin) with k ordered tap-major
    # ((dy*3+dx)*Cin + ci), matching the im2col row order; bf16 for the MXU.
    o, i, kh, kw = w_oihw.shape
    return jnp.transpose(w_oihw, (0, 2, 3, 1)).reshape(o, kh * kw * i).astype(jnp.bfloat16)


# ---------------------------------------------------------------------------
# Kernel 1: all heads' Conv2d(C, C, 3, pad=1) fused into one (G*C, 9*C) weight
# (head-major out channels == torch.cat(dim=1)).  One im2col build + one MXU
# matmul per image; emits masked pre-BN slab (bf16) + per-image BN partials.
# ---------------------------------------------------------------------------
def _heads_conv_kernel(xpf_ref, w_ref, mask_ref, pre_ref, sum_ref, sq_ref,
                       imcol_ref, *, wp):
    cin = xpf_ref.shape[1]
    slab = pre_ref.shape[2]
    # im2col: 9 contiguous lane-slices of the zero-padded flat image — no
    # per-tap window reshape copies, no HBM im2col.
    for t in range(9):
        dy, dx = divmod(t, 3)
        off = dy * wp + dx
        imcol_ref[t * cin:(t + 1) * cin, :] = xpf_ref[0, :, off:off + slab]
    # Single MXU matmul: (GC, 9*Cin) x (9*Cin, S) -> (GC, S), f32 accumulate.
    acc = jnp.dot(w_ref[...], imcol_ref[...], preferred_element_type=jnp.float32)
    # Zero the dead padded-row columns so BN stats are plain sums and the slab
    # doubles as the next conv's zero padding.
    acc = acc * mask_ref[...]
    pre = acc.astype(jnp.bfloat16)
    pre_ref[0] = pre
    # Stats on the bf16-rounded values that actually get normalised later.
    pf = pre.astype(jnp.float32)
    sum_ref[0] = jnp.sum(pf, axis=1, keepdims=True)
    sq_ref[0] = jnp.sum(pf * pf, axis=1, keepdims=True)


def _heads_conv(xpf, w1, mask, wp, slab):
    n, cin, lp = xpf.shape
    gc = w1.shape[0]
    return pl.pallas_call(
        functools.partial(_heads_conv_kernel, wp=wp),
        grid=(n,),
        in_specs=[
            pl.BlockSpec((1, cin, lp), lambda i: (i, 0, 0)),
            pl.BlockSpec((gc, 9 * cin), lambda i: (0, 0)),
            pl.BlockSpec((1, slab), lambda i: (0, 0)),
        ],
        out_specs=[
            pl.BlockSpec((1, gc, slab), lambda i: (i, 0, 0)),
            pl.BlockSpec((1, gc, 1), lambda i: (i, 0, 0)),
            pl.BlockSpec((1, gc, 1), lambda i: (i, 0, 0)),
        ],
        out_shape=[
            jax.ShapeDtypeStruct((n, gc, slab), jnp.bfloat16),
            jax.ShapeDtypeStruct((n, gc, 1), jnp.float32),
            jax.ShapeDtypeStruct((n, gc, 1), jnp.float32),
        ],
        scratch_shapes=[pltpu.VMEM((9 * cin, slab), jnp.bfloat16)],
        compiler_params=_PARALLEL,
    )(xpf, w1, mask)


# ---------------------------------------------------------------------------
# Kernel 2: head-BN finalize+apply + ReLU + zero-padded placement (VMEM) +
# fuse Conv2d(G*C, C, 3, pad=1) as one matmul.  Emits fuse pre-BN + partials.
# ---------------------------------------------------------------------------
def _fuse_conv_kernel(pre_ref, hsum_ref, hsq_ref, hg_ref, hb_ref, w_ref,
                      mask_ref, out_ref, fsum_ref, fsq_ref, epf_ref, imcol_ref,
                      *, wp, count):
    gc = pre_ref.shape[1]
    slab = out_ref.shape[2]
    lp = epf_ref.shape[1]
    lo = wp + 1

    # Head BatchNorm finalize: hsum/hsq blocks carry every image -> global.
    tsum = jnp.sum(hsum_ref[...], axis=0)                       # (GC, 1)
    tsq = jnp.sum(hsq_ref[...], axis=0)
    mean = tsum / count
    var = jnp.maximum(tsq / count - mean * mean, 0.0)
    scale = hg_ref[...] * jax.lax.rsqrt(var + BN_EPS)
    shift = hb_ref[...] - mean * scale

    # Head-BN apply + ReLU; re-zero dead columns (ReLU(shift) != 0 there) so
    # the slab is an exact zero-padded image for the fuse conv.
    e = jnp.maximum(pre_ref[0].astype(jnp.float32) * scale + shift, 0.0)
    e = e * mask_ref[...]

    # Only the two margin lane ranges are zeroed (not the whole scratch), and
    # every step rather than at program_id==0: the grid axis is "parallel", so
    # on v7x each TensorCore owns its own scratch instance.
    epf_ref[:, 0:lo] = jnp.zeros((gc, lo), jnp.bfloat16)
    epf_ref[:, lo + slab:] = jnp.zeros((gc, lp - lo - slab), jnp.bfloat16)
    epf_ref[:, lo:lo + slab] = e.astype(jnp.bfloat16)

    # im2col + single MXU matmul for the fuse conv.
    for t in range(9):
        dy, dx = divmod(t, 3)
        off = dy * wp + dx
        imcol_ref[t * gc:(t + 1) * gc, :] = epf_ref[:, off:off + slab]
    acc = jnp.dot(w_ref[...], imcol_ref[...], preferred_element_type=jnp.float32)
    acc = acc * mask_ref[...]
    out_ref[0] = acc
    fsum_ref[0] = jnp.sum(acc, axis=1, keepdims=True)
    fsq_ref[0] = jnp.sum(acc * acc, axis=1, keepdims=True)


def _fuse_conv(heads_pre, hsum, hsq, hg, hb, w2, mask, wp, lp, count):
    n, gc, slab = heads_pre.shape
    c = w2.shape[0]
    return pl.pallas_call(
        functools.partial(_fuse_conv_kernel, wp=wp, count=count),
        grid=(n,),
        in_specs=[
            pl.BlockSpec((1, gc, slab), lambda i: (i, 0, 0)),
            pl.BlockSpec((n, gc, 1), lambda i: (0, 0, 0)),
            pl.BlockSpec((n, gc, 1), lambda i: (0, 0, 0)),
            pl.BlockSpec((gc, 1), lambda i: (0, 0)),
            pl.BlockSpec((gc, 1), lambda i: (0, 0)),
            pl.BlockSpec((c, 9 * gc), lambda i: (0, 0)),
            pl.BlockSpec((1, slab), lambda i: (0, 0)),
        ],
        out_specs=[
            pl.BlockSpec((1, c, slab), lambda i: (i, 0, 0)),
            pl.BlockSpec((1, c, 1), lambda i: (i, 0, 0)),
            pl.BlockSpec((1, c, 1), lambda i: (i, 0, 0)),
        ],
        out_shape=[
            jax.ShapeDtypeStruct((n, c, slab), jnp.float32),
            jax.ShapeDtypeStruct((n, c, 1), jnp.float32),
            jax.ShapeDtypeStruct((n, c, 1), jnp.float32),
        ],
        scratch_shapes=[
            pltpu.VMEM((gc, lp), jnp.bfloat16),        # zero-padded activations
            pltpu.VMEM((9 * gc, slab), jnp.bfloat16),  # im2col
        ],
        compiler_params=_PARALLEL,
    )(heads_pre, hsum, hsq, hg, hb, w2, mask)


# ---------------------------------------------------------------------------
# Kernel 3: fuse-BN finalize+apply + ReLU + residual add + final BatchNorm2d
# (stats over valid pixels + apply) in one call — the whole batch is one block
# at these sizes, so the stats tile is global and no second pass is needed.
# ---------------------------------------------------------------------------
def _residual_norm_kernel(fuse_ref, x_ref, fsum_ref, fsq_ref, fg_ref, fb_ref,
                          ng_ref, nb_ref, mask_ref, out_ref, *, count):
    tsum = jnp.sum(fsum_ref[...], axis=0)                       # (C, 1)
    tsq = jnp.sum(fsq_ref[...], axis=0)
    mean = tsum / count
    var = jnp.maximum(tsq / count - mean * mean, 0.0)
    scale = fg_ref[...] * jax.lax.rsqrt(var + BN_EPS)
    shift = fb_ref[...] - mean * scale

    s = jnp.maximum(fuse_ref[...] * scale + shift, 0.0) + x_ref[...]   # (N,C,S)

    sm = s * mask_ref[...]                                       # dead cols -> 0
    nsum = jnp.sum(jnp.sum(sm, axis=2, keepdims=True), axis=0)   # (C, 1)
    nsq = jnp.sum(jnp.sum(sm * sm, axis=2, keepdims=True), axis=0)
    nmean = nsum / count
    nvar = jnp.maximum(nsq / count - nmean * nmean, 0.0)
    nscale = ng_ref[...] * jax.lax.rsqrt(nvar + BN_EPS)
    nshift = nb_ref[...] - nmean * nscale
    out_ref[...] = s * nscale + nshift


def _residual_norm(fuse_pre, x_slab, fsum, fsq, fg, fb, ng, nb, mask, count):
    n, c, slab = fuse_pre.shape
    return pl.pallas_call(
        functools.partial(_residual_norm_kernel, count=count),
        grid=(1,),
        in_specs=[
            pl.BlockSpec((n, c, slab), lambda i: (0, 0, 0)),
            pl.BlockSpec((n, c, slab), lambda i: (0, 0, 0)),
            pl.BlockSpec((n, c, 1), lambda i: (0, 0, 0)),
            pl.BlockSpec((n, c, 1), lambda i: (0, 0, 0)),
            pl.BlockSpec((c, 1), lambda i: (0, 0)),
            pl.BlockSpec((c, 1), lambda i: (0, 0)),
            pl.BlockSpec((c, 1), lambda i: (0, 0)),
            pl.BlockSpec((c, 1), lambda i: (0, 0)),
            pl.BlockSpec((1, slab), lambda i: (0, 0)),
        ],
        out_specs=pl.BlockSpec((n, c, slab), lambda i: (0, 0, 0)),
        out_shape=jax.ShapeDtypeStruct((n, c, slab), jnp.float32),
        compiler_params=_SINGLE,
    )(fuse_pre, x_slab, fsum, fsq, fg, fb, ng, nb, mask)


# ---------------------------------------------------------------------------
# Parameters (deterministic, synthetic — PyTorch OIHW layouts; no biases, see
# header note on bias/BN cancellation).
# ---------------------------------------------------------------------------
def init_params(key, num_heads, in_size):
    c = in_size
    gc = num_heads * c
    k1, k2 = jax.random.split(key)
    return {
        "head_w": 0.1 * jax.random.normal(k1, (gc, c, 3, 3), jnp.float32),
        "head_gamma": jnp.ones((gc, 1), jnp.float32),
        "head_beta": jnp.zeros((gc, 1), jnp.float32),
        "fuse_w": 0.1 * jax.random.normal(k2, (c, gc, 3, 3), jnp.float32),
        "fuse_gamma": jnp.ones((c, 1), jnp.float32),
        "fuse_beta": jnp.zeros((c, 1), jnp.float32),
        "norm_gamma": jnp.ones((c, 1), jnp.float32),
        "norm_beta": jnp.zeros((c, 1), jnp.float32),
    }


# ---------------------------------------------------------------------------
# multiHeadBlock2.forward
# ---------------------------------------------------------------------------
def multi_head_block2(x_nchw, params, num_heads):
    x = x_nchw.astype(jnp.float32)
    n, c, h, w = x.shape
    del num_heads  # head count is implicit in the fused head weights
    wp = w + 2
    slab = h * wp                                   # padded-row output slab
    lp = _round_up(slab + 2 * wp + 2, 128)          # flat padded-image length
    count = float(n * h * w)

    # Valid-pixel mask over the slab (dead columns x in {W, W+1} of each row).
    col = jnp.arange(slab, dtype=jnp.int32) % wp
    mask = (col < w).astype(jnp.float32).reshape(1, slab)

    # Zero-padded, flattened-spatial, bf16 input for the heads conv.
    # TODO(synk): at realistic sizes fold this pad/cast into the heads kernel
    # (per-row halo writes) instead of a separate XLA pass over x.
    xpf = jnp.pad(x, ((0, 0), (0, 0), (1, 1), (1, 1))).reshape(n, c, (h + 2) * wp)
    xpf = jnp.pad(xpf, ((0, 0), (0, 0), (0, lp - (h + 2) * wp))).astype(jnp.bfloat16)

    w1 = _to_matmul_weight(params["head_w"])        # (GC, 9*C)  bf16
    w2 = _to_matmul_weight(params["fuse_w"])        # (C, 9*GC)  bf16

    # --- G x SAHead2 == G x (conv3x3 + BN + ReLU), all heads in one matmul.
    heads_pre, hsum, hsq = _heads_conv(xpf, w1, mask, wp, slab)

    # --- SimpleUnetConv(G*C -> C, stride=1): head-BN/ReLU + conv3x3 fused.
    fuse_pre, fsum, fsq = _fuse_conv(heads_pre, hsum, hsq,
                                     params["head_gamma"], params["head_beta"],
                                     w2, mask, wp, lp, count)

    # --- residual add + final BatchNorm2d (stats + apply in one kernel).
    x_slab = jnp.pad(x, ((0, 0), (0, 0), (0, 0), (0, 2))).reshape(n, c, slab)
    out_slab = _residual_norm(fuse_pre, x_slab, fsum, fsq,
                              params["fuse_gamma"], params["fuse_beta"],
                              params["norm_gamma"], params["norm_beta"],
                              mask, count)

    # Drop the two dead columns per row (small XLA slice), stay NCHW.
    return out_slab.reshape(n, c, h, wp)[:, :, :, :w]


# ---------------------------------------------------------------------------
# Pure-JAX reference (mirrors the kernels' bf16 HBM / MXU boundaries so the
# comparison checks layout & BN logic rather than dtype noise).
# ---------------------------------------------------------------------------
def _reference_forward(x, params):
    f32 = jnp.float32
    rb = lambda a: a.astype(jnp.bfloat16).astype(f32)

    def conv3x3(inp, w_oihw):
        return jax.lax.conv_general_dilated(
            rb(inp), rb(w_oihw), window_strides=(1, 1),
            padding=((1, 1), (1, 1)),
            dimension_numbers=("NCHW", "OIHW", "NCHW"))

    def bn(t, gamma, beta):
        mean = jnp.mean(t, axis=(0, 2, 3), keepdims=True)
        var = jnp.mean((t - mean) ** 2, axis=(0, 2, 3), keepdims=True)
        g = gamma.reshape(1, -1, 1, 1)
        b = beta.reshape(1, -1, 1, 1)
        return (t - mean) * jax.lax.rsqrt(var + BN_EPS) * g + b

    heads_pre = rb(conv3x3(x, params["head_w"]))
    e = jax.nn.relu(bn(heads_pre, params["head_gamma"], params["head_beta"]))
    fuse_pre = conv3x3(e, params["fuse_w"])
    r = jax.nn.relu(bn(fuse_pre, params["fuse_gamma"], params["fuse_beta"]))
    return bn(r + x, params["norm_gamma"], params["norm_beta"])


if __name__ == "__main__":
    num_heads, in_size = 2, 4
    batch, height, width = 2, 16, 16

    key = jax.random.PRNGKey(0)
    k_in, k_par = jax.random.split(key)
    x = jax.random.normal(k_in, (batch, in_size, height, width), jnp.float32)
    params = init_params(k_par, num_heads, in_size)

    fwd = jax.jit(functools.partial(multi_head_block2, num_heads=num_heads))
    out = fwd(x, params)
    jax.block_until_ready(out)

    assert out.shape == (batch, in_size, height, width)
    assert bool(jnp.isfinite(out).all())

    ref = _reference_forward(x, params)
    err = float(jnp.max(jnp.abs(out - ref)))
    assert err < 2e-2, f"max abs error vs reference: {err}"
    print("KERNEL_OK")
</pallas_src>

<mosaic_0001>
module attributes {stable_mosaic.version = 11 : i64} {
  func.func @_heads_conv_kernel(%arg0: i32, %arg1: memref<1x4x384xbf16, #tpu.memory_space<vmem>>, %arg2: memref<8x36xbf16, #tpu.memory_space<vmem>>, %arg3: memref<1x288xf32, #tpu.memory_space<vmem>>, %arg4: memref<1x8x288xbf16, #tpu.memory_space<vmem>>, %arg5: memref<1x8x1xf32, #tpu.memory_space<vmem>>, %arg6: memref<1x8x1xf32, #tpu.memory_space<vmem>>, %arg7: memref<36x288xbf16, #tpu.memory_space<vmem>>) attributes {dimension_semantics = [#tpu.dimension_semantics<parallel>], iteration_bounds = array<i64: 2>, scalar_prefetch = 0 : i64, scratch_operands = 1 : i64, tpu.core_type = #tpu.core_type<tc>, window_params = [{transform_indices = @transform_0, window_bounds = array<i64: 1, 4, 384>}, {pipeline_mode = #tpu.pipeline_mode<synchronous>, transform_indices = @transform_1, window_bounds = array<i64: 8, 36>}, {pipeline_mode = #tpu.pipeline_mode<synchronous>, transform_indices = @transform_2, window_bounds = array<i64: 1, 288>}, {transform_indices = @transform_3, window_bounds = array<i64: 1, 8, 288>}, {transform_indices = @transform_4, window_bounds = array<i64: 1, 8, 1>}, {transform_indices = @transform_5, window_bounds = array<i64: 1, 8, 1>}]} {
    %c0 = arith.constant 0 : index
    %c0_0 = arith.constant 0 : index
    %c0_1 = arith.constant 0 : index
    %0 = vector.load %arg1[%c0, %c0_0, %c0_1] : memref<1x4x384xbf16, #tpu.memory_space<vmem>>, vector<1x4x288xbf16>
    %1 = vector.shape_cast %0 : vector<1x4x288xbf16> to vector<4x288xbf16>
    %c0_2 = arith.constant 0 : index
    %c0_3 = arith.constant 0 : index
    %2 = vector.load %arg7[%c0_2, %c0_3] : memref<36x288xbf16, #tpu.memory_space<vmem>>, vector<4x288xbf16>
    tpu.vector_store %arg7[%c0_2, %c0_3], %1 {strides = array<i32>} : memref<36x288xbf16, #tpu.memory_space<vmem>>, vector<4x288xbf16>,
    %c0_4 = arith.constant 0 : index
    %c0_5 = arith.constant 0 : index
    %c1 = arith.constant 1 : index
    %3 = vector.load %arg1[%c0_4, %c0_5, %c1] : memref<1x4x384xbf16, #tpu.memory_space<vmem>>, vector<1x4x288xbf16>
    %4 = vector.shape_cast %3 : vector<1x4x288xbf16> to vector<4x288xbf16>
    %c4 = arith.constant 4 : index
    %c0_6 = arith.constant 0 : index
    %5 = vector.load %arg7[%c4, %c0_6] : memref<36x288xbf16, #tpu.memory_space<vmem>>, vector<4x288xbf16>
    tpu.vector_store %arg7[%c4, %c0_6], %4 {strides = array<i32>} : memref<36x288xbf16, #tpu.memory_space<vmem>>, vector<4x288xbf16>,
    %c0_7 = arith.constant 0 : index
    %c0_8 = arith.constant 0 : index
    %c2 = arith.constant 2 : index
    %6 = vector.load %arg1[%c0_7, %c0_8, %c2] : memref<1x4x384xbf16, #tpu.memory_space<vmem>>, vector<1x4x288xbf16>
    %7 = vector.shape_cast %6 : vector<1x4x288xbf16> to vector<4x288xbf16>
    %c8 = arith.constant 8 : index
    %c0_9 = arith.constant 0 : index
    %8 = vector.load %arg7[%c8, %c0_9] : memref<36x288xbf16, #tpu.memory_space<vmem>>, vector<4x288xbf16>
    tpu.vector_store %arg7[%c8, %c0_9], %7 {strides = array<i32>} : memref<36x288xbf16, #tpu.memory_space<vmem>>, vector<4x288xbf16>,
    %c0_10 = arith.constant 0 : index
    %c0_11 = arith.constant 0 : index
    %c18 = arith.constant 18 : index
    %9 = vector.load %arg1[%c0_10, %c0_11, %c18] : memref<1x4x384xbf16, #tpu.memory_space<vmem>>, vector<1x4x288xbf16>
    %10 = vector.shape_cast %9 : vector<1x4x288xbf16> to vector<4x288xbf16>
    %c12 = arith.constant 12 : index
    %c0_12 = arith.constant 0 : index
    %11 = vector.load %arg7[%c12, %c0_12] : memref<36x288xbf16, #tpu.memory_space<vmem>>, vector<4x288xbf16>
    tpu.vector_store %arg7[%c12, %c0_12], %10 {strides = array<i32>} : memref<36x288xbf16, #tpu.memory_space<vmem>>, vector<4x288xbf16>,
    %c0_13 = arith.constant 0 : index
    %c0_14 = arith.constant 0 : index
    %c19 = arith.constant 19 : index
    %12 = vector.load %arg1[%c0_13, %c0_14, %c19] : memref<1x4x384xbf16, #tpu.memory_space<vmem>>, vector<1x4x288xbf16>
    %13 = vector.shape_cast %12 : vector<1x4x288xbf16> to vector<4x288xbf16>
    %c16 = arith.constant 16 : index
    %c0_15 = arith.constant 0 : index
    %14 = vector.load %arg7[%c16, %c0_15] : memref<36x288xbf16, #tpu.memory_space<vmem>>, vector<4x288xbf16>
    tpu.vector_store %arg7[%c16, %c0_15], %13 {strides = array<i32>} : memref<36x288xbf16, #tpu.memory_space<vmem>>, vector<4x288xbf16>,
    %c0_16 = arith.constant 0 : index
    %c0_17 = arith.constant 0 : index
    %c20 = arith.constant 20 : index
    %15 = vector.load %arg1[%c0_16, %c0_17, %c20] : memref<1x4x384xbf16, #tpu.memory_space<vmem>>, vector<1x4x288xbf16>
    %16 = vector.shape_cast %15 : vector<1x4x288xbf16> to vector<4x288xbf16>
    %c20_18 = arith.constant 20 : index
    %c0_19 = arith.constant 0 : index
    %17 = vector.load %arg7[%c20_18, %c0_19] : memref<36x288xbf16, #tpu.memory_space<vmem>>, vector<4x288xbf16>
    tpu.vector_store %arg7[%c20_18, %c0_19], %16 {strides = array<i32>} : memref<36x288xbf16, #tpu.memory_space<vmem>>, vector<4x288xbf16>,
    %c0_20 = arith.constant 0 : index
    %c0_21 = arith.constant 0 : index
    %c36 = arith.constant 36 : index
    %18 = vector.load %arg1[%c0_20, %c0_21, %c36] : memref<1x4x384xbf16, #tpu.memory_space<vmem>>, vector<1x4x288xbf16>
    %19 = vector.shape_cast %18 : vector<1x4x288xbf16> to vector<4x288xbf16>
    %c24 = arith.constant 24 : index
    %c0_22 = arith.constant 0 : index
    %20 = vector.load %arg7[%c24, %c0_22] : memref<36x288xbf16, #tpu.memory_space<vmem>>, vector<4x288xbf16>
    tpu.vector_store %arg7[%c24, %c0_22], %19 {strides = array<i32>} : memref<36x288xbf16, #tpu.memory_space<vmem>>, vector<4x288xbf16>,
    %c0_23 = arith.constant 0 : index
    %c0_24 = arith.constant 0 : index
    %c37 = arith.constant 37 : index
    %21 = vector.load %arg1[%c0_23, %c0_24, %c37] : memref<1x4x384xbf16, #tpu.memory_space<vmem>>, vector<1x4x288xbf16>
    %22 = vector.shape_cast %21 : vector<1x4x288xbf16> to vector<4x288xbf16>
    %c28 = arith.constant 28 : index
    %c0_25 = arith.constant 0 : index
    %23 = vector.load %arg7[%c28, %c0_25] : memref<36x288xbf16, #tpu.memory_space<vmem>>, vector<4x288xbf16>
    tpu.vector_store %arg7[%c28, %c0_25], %22 {strides = array<i32>} : memref<36x288xbf16, #tpu.memory_space<vmem>>, vector<4x288xbf16>,
    %c0_26 = arith.constant 0 : index
    %c0_27 = arith.constant 0 : index
    %c38 = arith.constant 38 : index
    %24 = vector.load %arg1[%c0_26, %c0_27, %c38] : memref<1x4x384xbf16, #tpu.memory_space<vmem>>, vector<1x4x288xbf16>
    %25 = vector.shape_cast %24 : vector<1x4x288xbf16> to vector<4x288xbf16>
    %c32 = arith.constant 32 : index
    %c0_28 = arith.constant 0 : index
    %26 = vector.load %arg7[%c32, %c0_28] : memref<36x288xbf16, #tpu.memory_space<vmem>>, vector<4x288xbf16>
    tpu.vector_store %arg7[%c32, %c0_28], %25 {strides = array<i32>} : memref<36x288xbf16, #tpu.memory_space<vmem>>, vector<4x288xbf16>,
    %c0_29 = arith.constant 0 : index
    %c0_30 = arith.constant 0 : index
    %27 = vector.load %arg2[%c0_29, %c0_30] : memref<8x36xbf16, #tpu.memory_space<vmem>>, vector<8x36xbf16>
    %c0_31 = arith.constant 0 : index
    %c0_32 = arith.constant 0 : index
    %28 = vector.load %arg7[%c0_31, %c0_32] : memref<36x288xbf16, #tpu.memory_space<vmem>>, vector<36x288xbf16>
    %cst = arith.constant dense<0.000000e+00> : vector<8x288xf32>
    %29 = tpu.matmul %27, %28, %cst {dimension_numbers = #tpu.dot_dimension_numbers<[1], [0], [0], [1], [0, 0, 1, 1], [], []>} : vector<8x36xbf16>, vector<36x288xbf16>, vector<8x288xf32> -> vector<8x288xf32>
    %c0_33 = arith.constant 0 : index
    %c0_34 = arith.constant 0 : index
    %30 = vector.load %arg3[%c0_33, %c0_34] : memref<1x288xf32, #tpu.memory_space<vmem>>, vector<1x288xf32>
    %31 = vector.broadcast %30 : vector<1x288xf32> to vector<8x288xf32>
    %32 = arith.mulf %29, %31 : vector<8x288xf32>
    %33 = arith.truncf %32 : vector<8x288xf32> to vector<8x288xbf16>
    %c0_35 = arith.constant 0 : index
    %c0_36 = arith.constant 0 : index
    %c0_37 = arith.constant 0 : index
    %34 = vector.load %arg4[%c0_35, %c0_36, %c0_37] : memref<1x8x288xbf16, #tpu.memory_space<vmem>>, vector<1x8x288xbf16>
    %35 = vector.shape_cast %34 : vector<1x8x288xbf16> to vector<8x288xbf16>
    %36 = vector.shape_cast %33 : vector<8x288xbf16> to vector<1x8x288xbf16>
    tpu.vector_store %arg4[%c0_35, %c0_36, %c0_37], %36 {strides = array<i32>} : memref<1x8x288xbf16, #tpu.memory_space<vmem>>, vector<1x8x288xbf16>,
    %37 = arith.extf %33 : vector<8x288xbf16> to vector<8x288xf32>
    %cst_38 = arith.constant dense<0.000000e+00> : vector<8xf32>
    %38 = vector.multi_reduction <add>, %37, %cst_38 [1] : vector<8x288xf32> to vector<8xf32>
    %39 = vector.shape_cast %38 : vector<8xf32> to vector<8x1xf32>
    %c0_39 = arith.constant 0 : index
    %c0_40 = arith.constant 0 : index
    %c0_41 = arith.constant 0 : index
    %40 = vector.load %arg5[%c0_39, %c0_40, %c0_41] : memref<1x8x1xf32, #tpu.memory_space<vmem>>, vector<1x8x1xf32>
    %41 = vector.shape_cast %40 : vector<1x8x1xf32> to vector<8x1xf32>
    %42 = vector.shape_cast %39 : vector<8x1xf32> to vector<1x8x1xf32>
    tpu.vector_store %arg5[%c0_39, %c0_40, %c0_41], %42 {strides = array<i32>} : memref<1x8x1xf32, #tpu.memory_space<vmem>>, vector<1x8x1xf32>,
    %43 = arith.mulf %37, %37 : vector<8x288xf32>
    %cst_42 = arith.constant dense<0.000000e+00> : vector<8xf32>
    %44 = vector.multi_reduction <add>, %43, %cst_42 [1] : vector<8x288xf32> to vector<8xf32>
    %45 = vector.shape_cast %44 : vector<8xf32> to vector<8x1xf32>
    %c0_43 = arith.constant 0 : index
    %c0_44 = arith.constant 0 : index
    %c0_45 = arith.constant 0 : index
    %46 = vector.load %arg6[%c0_43, %c0_44, %c0_45] : memref<1x8x1xf32, #tpu.memory_space<vmem>>, vector<1x8x1xf32>
    %47 = vector.shape_cast %46 : vector<1x8x1xf32> to vector<8x1xf32>
    %48 = vector.shape_cast %45 : vector<8x1xf32> to vector<1x8x1xf32>
    tpu.vector_store %arg6[%c0_43, %c0_44, %c0_45], %48 {strides = array<i32>} : memref<1x8x1xf32, #tpu.memory_space<vmem>>, vector<1x8x1xf32>,
    return
  }
  func.func @transform_0(%arg0: i32) -> (i32, i32, i32) {
    %c0_i32 = arith.constant 0 : i32
    %c0_i32_0 = arith.constant 0 : i32
    %c0_i32_1 = arith.constant 0 : i32
    return %arg0, %c0_i32, %c0_i32_0 : i32, i32, i32
  }
  func.func @transform_1(%arg0: i32) -> (i32, i32) {
    %c0_i32 = arith.constant 0 : i32
    %c0_i32_0 = arith.constant 0 : i32
    %c0_i32_1 = arith.constant 0 : i32
    return %c0_i32, %c0_i32_0 : i32, i32
  }
  func.func @transform_2(%arg0: i32) -> (i32, i32) {
    %c0_i32 = arith.constant 0 : i32
    %c0_i32_0 = arith.constant 0 : i32
    %c0_i32_1 = arith.constant 0 : i32
    return %c0_i32, %c0_i32_0 : i32, i32
  }
  func.func @transform_3(%arg0: i32) -> (i32, i32, i32) {
    %c0_i32 = arith.constant 0 : i32
    %c0_i32_0 = arith.constant 0 : i32
    %c0_i32_1 = arith.constant 0 : i32
    return %arg0, %c0_i32, %c0_i32_0 : i32, i32, i32
  }
  func.func @transform_4(%arg0: i32) -> (i32, i32, i32) {
    %c0_i32 = arith.constant 0 : i32
    %c0_i32_0 = arith.constant 0 : i32
    %c0_i32_1 = arith.constant 0 : i32
    return %arg0, %c0_i32, %c0_i32_0 : i32, i32, i32
  }
  func.func @transform_5(%arg0: i32) -> (i32, i32, i32) {
    %c0_i32 = arith.constant 0 : i32
    %c0_i32_0 = arith.constant 0 : i32
    %c0_i32_1 = arith.constant 0 : i32
    return %arg0, %c0_i32, %c0_i32_0 : i32, i32, i32
  }
}

module attributes {stable_mosaic.version = 11 : i64} {
  func.func @_fuse_conv_kernel(%arg0: i32, %arg1: memref<1x8x288xbf16, #tpu.memory_space<vmem>>, %arg2: memref<2x8x1xf32, #tpu.memory_space<vmem>>, %arg3: memref<2x8x1xf32, #tpu.memory_space<vmem>>, %arg4: memref<8x1xf32, #tpu.memory_space<vmem>>, %arg5: memref<8x1xf32, #tpu.memory_space<vmem>>, %arg6: memref<4x72xbf16, #tpu.memory_space<vmem>>, %arg7: memref<1x288xf32, #tpu.memory_space<vmem>>, %arg8: memref<1x4x288xf32, #tpu.memory_space<vmem>>, %arg9: memref<1x4x1xf32, #tpu.memory_space<vmem>>, %arg10: memref<1x4x1xf32, #tpu.memory_space<vmem>>, %arg11: memref<8x384xbf16, #tpu.memory_space<vmem>>, %arg12: memref<72x288xbf16, #tpu.memory_space<vmem>>) attributes {dimension_semantics = [#tpu.dimension_semantics<parallel>], iteration_bounds = array<i64: 2>, scalar_prefetch = 0 : i64, scratch_operands = 2 : i64, tpu.core_type = #tpu.core_type<tc>, window_params = [{transform_indices = @transform_0, window_bounds = array<i64: 1, 8, 288>}, {pipeline_mode = #tpu.pipeline_mode<synchronous>, transform_indices = @transform_1, window_bounds = array<i64: 2, 8, 1>}, {pipeline_mode = #tpu.pipeline_mode<synchronous>, transform_indices = @transform_2, window_bounds = array<i64: 2, 8, 1>}, {pipeline_mode = #tpu.pipeline_mode<synchronous>, transform_indices = @transform_3, window_bounds = array<i64: 8, 1>}, {pipeline_mode = #tpu.pipeline_mode<synchronous>, transform_indices = @transform_4, window_bounds = array<i64: 8, 1>}, {pipeline_mode = #tpu.pipeline_mode<synchronous>, transform_indices = @transform_5, window_bounds = array<i64: 4, 72>}, {pipeline_mode = #tpu.pipeline_mode<synchronous>, transform_indices = @transform_6, window_bounds = array<i64: 1, 288>}, {transform_indices = @transform_7, window_bounds = array<i64: 1, 4, 288>}, {transform_indices = @transform_8, window_bounds = array<i64: 1, 4, 1>}, {transform_indices = @transform_9, window_bounds = array<i64: 1, 4, 1>}]} {
    %c0 = arith.constant 0 : index
    %c0_0 = arith.constant 0 : index
    %c0_1 = arith.constant 0 : index
    %0 = vector.load %arg2[%c0, %c0_0, %c0_1] : memref<2x8x1xf32, #tpu.memory_space<vmem>>, vector<2x8x1xf32>
    %cst = arith.constant dense<0.000000e+00> : vector<8x1xf32>
    %1 = vector.multi_reduction <add>, %0, %cst [0] : vector<2x8x1xf32> to vector<8x1xf32>
    %c0_2 = arith.constant 0 : index
    %c0_3 = arith.constant 0 : index
    %c0_4 = arith.constant 0 : index
    %2 = vector.load %arg3[%c0_2, %c0_3, %c0_4] : memref<2x8x1xf32, #tpu.memory_space<vmem>>, vector<2x8x1xf32>
    %cst_5 = arith.constant dense<0.000000e+00> : vector<8x1xf32>
    %3 = vector.multi_reduction <add>, %2, %cst_5 [0] : vector<2x8x1xf32> to vector<8x1xf32>
    %cst_6 = arith.constant 5.120000e+02 : f32
    %4 = vector.broadcast %cst_6 : f32 to vector<8x1xf32>
    %5 = arith.divf %1, %4 : vector<8x1xf32>
    %cst_7 = arith.constant 5.120000e+02 : f32
    %6 = vector.broadcast %cst_7 : f32 to vector<8x1xf32>
    %7 = arith.divf %3, %6 : vector<8x1xf32>
    %8 = arith.mulf %5, %5 : vector<8x1xf32>
    %9 = arith.subf %7, %8 : vector<8x1xf32>
    %cst_8 = arith.constant 0.000000e+00 : f32
    %10 = vector.broadcast %cst_8 : f32 to vector<8x1xf32>
    %11 = arith.maximumf %9, %10 : vector<8x1xf32>
    %c0_9 = arith.constant 0 : index
    %c0_10 = arith.constant 0 : index
    %12 = vector.load %arg4[%c0_9, %c0_10] : memref<8x1xf32, #tpu.memory_space<vmem>>, vector<8x1xf32>
    %cst_11 = arith.constant 9.99999974E-6 : f32
    %13 = vector.broadcast %cst_11 : f32 to vector<8x1xf32>
    %14 = arith.addf %11, %13 : vector<8x1xf32>
    %15 = math.rsqrt %14 : vector<8x1xf32>
    %16 = arith.mulf %12, %15 : vector<8x1xf32>
    %c0_12 = arith.constant 0 : index
    %c0_13 = arith.constant 0 : index
    %17 = vector.load %arg5[%c0_12, %c0_13] : memref<8x1xf32, #tpu.memory_space<vmem>>, vector<8x1xf32>
    %18 = arith.mulf %5, %16 : vector<8x1xf32>
    %19 = arith.subf %17, %18 : vector<8x1xf32>
    %c0_14 = arith.constant 0 : index
    %c0_15 = arith.constant 0 : index
    %c0_16 = arith.constant 0 : index
    %20 = vector.load %arg1[%c0_14, %c0_15, %c0_16] : memref<1x8x288xbf16, #tpu.memory_space<vmem>>, vector<1x8x288xbf16>
    %21 = vector.shape_cast %20 : vector<1x8x288xbf16> to vector<8x288xbf16>
    %22 = arith.extf %21 : vector<8x288xbf16> to vector<8x288xf32>
    %23 = vector.broadcast %16 : vector<8x1xf32> to vector<8x288xf32>
    %24 = arith.mulf %22, %23 : vector<8x288xf32>
    %25 = vector.broadcast %19 : vector<8x1xf32> to vector<8x288xf32>
    %26 = arith.addf %24, %25 : vector<8x288xf32>
    %cst_17 = arith.constant 0.000000e+00 : f32
    %27 = vector.broadcast %cst_17 : f32 to vector<8x288xf32>
    %28 = arith.maximumf %26, %27 : vector<8x288xf32>
    %c0_18 = arith.constant 0 : index
    %c0_19 = arith.constant 0 : index
    %29 = vector.load %arg7[%c0_18, %c0_19] : memref<1x288xf32, #tpu.memory_space<vmem>>, vector<1x288xf32>
    %30 = vector.broadcast %29 : vector<1x288xf32> to vector<8x288xf32>
    %31 = arith.mulf %28, %30 : vector<8x288xf32>
    %cst_20 = arith.constant 0.000000e+00 : bf16
    %32 = vector.broadcast %cst_20 : bf16 to vector<8x19xbf16>
    %c0_21 = arith.constant 0 : index
    %c0_22 = arith.constant 0 : index
    %33 = vector.load %arg11[%c0_21, %c0_22] : memref<8x384xbf16, #tpu.memory_space<vmem>>, vector<8x19xbf16>
    tpu.vector_store %arg11[%c0_21, %c0_22], %32 {strides = array<i32>} : memref<8x384xbf16, #tpu.memory_space<vmem>>, vector<8x19xbf16>,
    %cst_23 = arith.constant 0.000000e+00 : bf16
    %34 = vector.broadcast %cst_23 : bf16 to vector<8x77xbf16>
    %c0_24 = arith.constant 0 : index
    %c307 = arith.constant 307 : index
    %35 = vector.load %arg11[%c0_24, %c307] : memref<8x384xbf16, #tpu.memory_space<vmem>>, vector<8x77xbf16>
    tpu.vector_store %arg11[%c0_24, %c307], %34 {strides = array<i32>} : memref<8x384xbf16, #tpu.memory_space<vmem>>, vector<8x77xbf16>,
    %36 = arith.truncf %31 : vector<8x288xf32> to vector<8x288xbf16>
    %c0_25 = arith.constant 0 : index
    %c19 = arith.constant 19 : index
    %37 = vector.load %arg11[%c0_25, %c19] : memref<8x384xbf16, #tpu.memory_space<vmem>>, vector<8x288xbf16>
    tpu.vector_store %arg11[%c0_25, %c19], %36 {strides = array<i32>} : memref<8x384xbf16, #tpu.memory_space<vmem>>, vector<8x288xbf16>,
    %c0_26 = arith.constant 0 : index
    %c0_27 = arith.constant 0 : index
    %38 = vector.load %arg11[%c0_26, %c0_27] : memref<8x384xbf16, #tpu.memory_space<vmem>>, vector<8x288xbf16>
    %c0_28 = arith.constant 0 : index
    %c0_29 = arith.constant 0 : index
    %39 = vector.load %arg12[%c0_28, %c0_29] : memref<72x288xbf16, #tpu.memory_space<vmem>>, vector<8x288xbf16>
    tpu.vector_store %arg12[%c0_28, %c0_29], %38 {strides = array<i32>} : memref<72x288xbf16, #tpu.memory_space<vmem>>, vector<8x288xbf16>,
    %c0_30 = arith.constant 0 : index
    %c1 = arith.constant 1 : index
    %40 = vector.load %arg11[%c0_30, %c1] : memref<8x384xbf16, #tpu.memory_space<vmem>>, vector<8x288xbf16>
    %c8 = arith.constant 8 : index
    %c0_31 = arith.constant 0 : index
    %41 = vector.load %arg12[%c8, %c0_31] : memref<72x288xbf16, #tpu.memory_space<vmem>>, vector<8x288xbf16>
    tpu.vector_store %arg12[%c8, %c0_31], %40 {strides = array<i32>} : memref<72x288xbf16, #tpu.memory_space<vmem>>, vector<8x288xbf16>,
    %c0_32 = arith.constant 0 : index
    %c2 = arith.constant 2 : index
    %42 = vector.load %arg11[%c0_32, %c2] : memref<8x384xbf16, #tpu.memory_space<vmem>>, vector<8x288xbf16>
    %c16 = arith.constant 16 : index
    %c0_33 = arith.constant 0 : index
    %43 = vector.load %arg12[%c16, %c0_33] : memref<72x288xbf16, #tpu.memory_space<vmem>>, vector<8x288xbf16>
    tpu.vector_store %arg12[%c16, %c0_33], %42 {strides = array<i32>} : memref<72x288xbf16, #tpu.memory_space<vmem>>, vector<8x288xbf16>,
    %c0_34 = arith.constant 0 : index
    %c18 = arith.constant 18 : index
    %44 = vector.load %arg11[%c0_34, %c18] : memref<8x384xbf16, #tpu.memory_space<vmem>>, vector<8x288xbf16>
    %c24 = arith.constant 24 : index
    %c0_35 = arith.constant 0 : index
    %45 = vector.load %arg12[%c24, %c0_35] : memref<72x288xbf16, #tpu.memory_space<vmem>>, vector<8x288xbf16>
    tpu.vector_store %arg12[%c24, %c0_35], %44 {strides = array<i32>} : memref<72x288xbf16, #tpu.memory_space<vmem>>, vector<8x288xbf16>,
    %c0_36 = arith.constant 0 : index
    %c19_37 = arith.constant 19 : index
    %46 = vector.load %arg11[%c0_36, %c19_37] : memref<8x384xbf16, #tpu.memory_space<vmem>>, vector<8x288xbf16>
    %c32 = arith.constant 32 : index
    %c0_38 = arith.constant 0 : index
    %47 = vector.load %arg12[%c32, %c0_38] : memref<72x288xbf16, #tpu.memory_space<vmem>>, vector<8x288xbf16>
    tpu.vector_store %arg12[%c32, %c0_38], %46 {strides = array<i32>} : memref<72x288xbf16, #tpu.memory_space<vmem>>, vector<8x288xbf16>,
    %c0_39 = arith.constant 0 : index
    %c20 = arith.constant 20 : index
    %48 = vector.load %arg11[%c0_39, %c20] : memref<8x384xbf16, #tpu.memory_space<vmem>>, vector<8x288xbf16>
    %c40 = arith.constant 40 : index
    %c0_40 = arith.constant 0 : index
    %49 = vector.load %arg12[%c40, %c0_40] : memref<72x288xbf16, #tpu.memory_space<vmem>>, vector<8x288xbf16>
    tpu.vector_store %arg12[%c40, %c0_40], %48 {strides = array<i32>} : memref<72x288xbf16, #tpu.memory_space<vmem>>, vector<8x288xbf16>,
    %c0_41 = arith.constant 0 : index
    %c36 = arith.constant 36 : index
    %50 = vector.load %arg11[%c0_41, %c36] : memref<8x384xbf16, #tpu.memory_space<vmem>>, vector<8x288xbf16>
    %c48 = arith.constant 48 : index
    %c0_42 = arith.constant 0 : index
    %51 = vector.load %arg12[%c48, %c0_42] : memref<72x288xbf16, #tpu.memory_space<vmem>>, vector<8x288xbf16>
    tpu.vector_store %arg12[%c48, %c0_42], %50 {strides = array<i32>} : memref<72x288xbf16, #tpu.memory_space<vmem>>, vector<8x288xbf16>,
    %c0_43 = arith.constant 0 : index
    %c37 = arith.constant 37 : index
    %52 = vector.load %arg11[%c0_43, %c37] : memref<8x384xbf16, #tpu.memory_space<vmem>>, vector<8x288xbf16>
    %c56 = arith.constant 56 : index
    %c0_44 = arith.constant 0 : index
    %53 = vector.load %arg12[%c56, %c0_44] : memref<72x288xbf16, #tpu.memory_space<vmem>>, vector<8x288xbf16>
    tpu.vector_store %arg12[%c56, %c0_44], %52 {strides = array<i32>} : memref<72x288xbf16, #tpu.memory_space<vmem>>, vector<8x288xbf16>,
    %c0_45 = arith.constant 0 : index
    %c38 = arith.constant 38 : index
    %54 = vector.load %arg11[%c0_45, %c38] : memref<8x384xbf16, #tpu.memory_space<vmem>>, vector<8x288xbf16>
    %c64 = arith.constant 64 : index
    %c0_46 = arith.constant 0 : index
    %55 = vector.load %arg12[%c64, %c0_46] : memref<72x288xbf16, #tpu.memory_space<vmem>>, vector<8x288xbf16>
    tpu.vector_store %arg12[%c64, %c0_46], %54 {strides = array<i32>} : memref<72x288xbf16, #tpu.memory_space<vmem>>, vector<8x288xbf16>,
    %c0_47 = arith.constant 0 : index
    %c0_48 = arith.constant 0 : index
    %56 = vector.load %arg6[%c0_47, %c0_48] : memref<4x72xbf16, #tpu.memory_space<vmem>>, vector<4x72xbf16>
    %c0_49 = arith.constant 0 : index
    %c0_50 = arith.constant 0 : index
    %57 = vector.load %arg12[%c0_49, %c0_50] : memref<72x288xbf16, #tpu.memory_space<vmem>>, vector<72x288xbf16>
    %cst_51 = arith.constant dense<0.000000e+00> : vector<4x288xf32>
    %58 = tpu.matmul %56, %57, %cst_51 {dimension_numbers = #tpu.dot_dimension_numbers<[1], [0], [0], [1], [0, 0, 1, 1], [], []>} : vector<4x72xbf16>, vector<72x288xbf16>, vector<4x288xf32> -> vector<4x288xf32>
    %c0_52 = arith.constant 0 : index
    %c0_53 = arith.constant 0 : index
    %59 = vector.load %arg7[%c0_52, %c0_53] : memref<1x288xf32, #tpu.memory_space<vmem>>, vector<1x288xf32>
    %60 = vector.broadcast %59 : vector<1x288xf32> to vector<4x288xf32>
    %61 = arith.mulf %58, %60 : vector<4x288xf32>
    %c0_54 = arith.constant 0 : index
    %c0_55 = arith.constant 0 : index
    %c0_56 = arith.constant 0 : index
    %62 = vector.load %arg8[%c0_54, %c0_55, %c0_56] : memref<1x4x288xf32, #tpu.memory_space<vmem>>, vector<1x4x288xf32>
    %63 = vector.shape_cast %62 : vector<1x4x288xf32> to vector<4x288xf32>
    %64 = vector.shape_cast %61 : vector<4x288xf32> to vector<1x4x288xf32>
    tpu.vector_store %arg8[%c0_54, %c0_55, %c0_56], %64 {strides = array<i32>} : memref<1x4x288xf32, #tpu.memory_space<vmem>>, vector<1x4x288xf32>,
    %cst_57 = arith.constant dense<0.000000e+00> : vector<4xf32>
    %65 = vector.multi_reduction <add>, %61, %cst_57 [1] : vector<4x288xf32> to vector<4xf32>
    %66 = vector.shape_cast %65 : vector<4xf32> to vector<4x1xf32>
    %c0_58 = arith.constant 0 : index
    %c0_59 = arith.constant 0 : index
    %c0_60 = arith.constant 0 : index
    %67 = vector.load %arg9[%c0_58, %c0_59, %c0_60] : memref<1x4x1xf32, #tpu.memory_space<vmem>>, vector<1x4x1xf32>
    %68 = vector.shape_cast %67 : vector<1x4x1xf32> to vector<4x1xf32>
    %69 = vector.shape_cast %66 : vector<4x1xf32> to vector<1x4x1xf32>
    tpu.vector_store %arg9[%c0_58, %c0_59, %c0_60], %69 {strides = array<i32>} : memref<1x4x1xf32, #tpu.memory_space<vmem>>, vector<1x4x1xf32>,
    %70 = arith.mulf %61, %61 : vector<4x288xf32>
    %cst_61 = arith.constant dense<0.000000e+00> : vector<4xf32>
    %71 = vector.multi_reduction <add>, %70, %cst_61 [1] : vector<4x288xf32> to vector<4xf32>
    %72 = vector.shape_cast %71 : vector<4xf32> to vector<4x1xf32>
    %c0_62 = arith.constant 0 : index
    %c0_63 = arith.constant 0 : index
    %c0_64 = arith.constant 0 : index
    %73 = vector.load %arg10[%c0_62, %c0_63, %c0_64] : memref<1x4x1xf32, #tpu.memory_space<vmem>>, vector<1x4x1xf32>
    %74 = vector.shape_cast %73 : vector<1x4x1xf32> to vector<4x1xf32>
    %75 = vector.shape_cast %72 : vector<4x1xf32> to vector<1x4x1xf32>
    tpu.vector_store %arg10[%c0_62, %c0_63, %c0_64], %75 {strides = array<i32>} : memref<1x4x1xf32, #tpu.memory_space<vmem>>, vector<1x4x1xf32>,
    return
  }
  func.func @transform_0(%arg0: i32) -> (i32, i32, i32) {
    %c0_i32 = arith.constant 0 : i32
    %c0_i32_0 = arith.constant 0 : i32
    %c0_i32_1 = arith.constant 0 : i32
    return %arg0, %c0_i32, %c0_i32_0 : i32, i32, i32
  }
  func.func @transform_1(%arg0: i32) -> (i32, i32, i32) {
    %c0_i32 = arith.constant 0 : i32
    %c0_i32_0 = arith.constant 0 : i32
    %c0_i32_1 = arith.constant 0 : i32
    %c0_i32_2 = arith.constant 0 : i32
    return %c0_i32, %c0_i32_0, %c0_i32_1 : i32, i32, i32
  }
  func.func @transform_2(%arg0: i32) -> (i32, i32, i32) {
    %c0_i32 = arith.constant 0 : i32
    %c0_i32_0 = arith.constant 0 : i32
    %c0_i32_1 = arith.constant 0 : i32
    %c0_i32_2 = arith.constant 0 : i32
    return %c0_i32, %c0_i32_0, %c0_i32_1 : i32, i32, i32
  }
  func.func @transform_3(%arg0: i32) -> (i32, i32) {
    %c0_i32 = arith.constant 0 : i32
    %c0_i32_0 = arith.constant 0 : i32
    %c0_i32_1 = arith.constant 0 : i32
    return %c0_i32, %c0_i32_0 : i32, i32
  }
  func.func @transform_4(%arg0: i32) -> (i32, i32) {
    %c0_i32 = arith.constant 0 : i32
    %c0_i32_0 = arith.constant 0 : i32
    %c0_i32_1 = arith.constant 0 : i32
    return %c0_i32, %c0_i32_0 : i32, i32
  }
  func.func @transform_5(%arg0: i32) -> (i32, i32) {
    %c0_i32 = arith.constant 0 : i32
    %c0_i32_0 = arith.constant 0 : i32
    %c0_i32_1 = arith.constant 0 : i32
    return %c0_i32, %c0_i32_0 : i32, i32
  }
  func.func @transform_6(%arg0: i32) -> (i32, i32) {
    %c0_i32 = arith.constant 0 : i32
    %c0_i32_0 = arith.constant 0 : i32
    %c0_i32_1 = arith.constant 0 : i32
    return %c0_i32, %c0_i32_0 : i32, i32
  }
  func.func @transform_7(%arg0: i32) -> (i32, i32, i32) {
    %c0_i32 = arith.constant 0 : i32
    %c0_i32_0 = arith.constant 0 : i32
    %c0_i32_1 = arith.constant 0 : i32
    return %arg0, %c0_i32, %c0_i32_0 : i32, i32, i32
  }
  func.func @transform_8(%arg0: i32) -> (i32, i32, i32) {
    %c0_i32 = arith.constant 0 : i32
    %c0_i32_0 = arith.constant 0 : i32
    %c0_i32_1 = arith.constant 0 : i32
    return %arg0, %c0_i32, %c0_i32_0 : i32, i32, i32
  }
  func.func @transform_9(%arg0: i32) -> (i32, i32, i32) {
    %c0_i32 = arith.constant 0 : i32
    %c0_i32_0 = arith.constant 0 : i32
    %c0_i32_1 = arith.constant 0 : i32
    return %arg0, %c0_i32, %c0_i32_0 : i32, i32, i32
  }
}

module attributes {stable_mosaic.version = 11 : i64} {
  func.func @_residual_norm_kernel(%arg0: i32, %arg1: memref<2x4x288xf32, #tpu.memory_space<vmem>>, %arg2: memref<2x4x288xf32, #tpu.memory_space<vmem>>, %arg3: memref<2x4x1xf32, #tpu.memory_space<vmem>>, %arg4: memref<2x4x1xf32, #tpu.memory_space<vmem>>, %arg5: memref<4x1xf32, #tpu.memory_space<vmem>>, %arg6: memref<4x1xf32, #tpu.memory_space<vmem>>, %arg7: memref<4x1xf32, #tpu.memory_space<vmem>>, %arg8: memref<4x1xf32, #tpu.memory_space<vmem>>, %arg9: memref<1x288xf32, #tpu.memory_space<vmem>>, %arg10: memref<2x4x288xf32, #tpu.memory_space<vmem>>) attributes {dimension_semantics = [#tpu.dimension_semantics<arbitrary>], iteration_bounds = array<i64: 1>, scalar_prefetch = 0 : i64, scratch_operands = 0 : i64, tpu.core_type = #tpu.core_type<tc>, window_params = [{pipeline_mode = #tpu.pipeline_mode<synchronous>, transform_indices = @transform_0, window_bounds = array<i64: 2, 4, 288>}, {pipeline_mode = #tpu.pipeline_mode<synchronous>, transform_indices = @transform_1, window_bounds = array<i64: 2, 4, 288>}, {pipeline_mode = #tpu.pipeline_mode<synchronous>, transform_indices = @transform_2, window_bounds = array<i64: 2, 4, 1>}, {pipeline_mode = #tpu.pipeline_mode<synchronous>, transform_indices = @transform_3, window_bounds = array<i64: 2, 4, 1>}, {pipeline_mode = #tpu.pipeline_mode<synchronous>, transform_indices = @transform_4, window_bounds = array<i64: 4, 1>}, {pipeline_mode = #tpu.pipeline_mode<synchronous>, transform_indices = @transform_5, window_bounds = array<i64: 4, 1>}, {pipeline_mode = #tpu.pipeline_mode<synchronous>, transform_indices = @transform_6, window_bounds = array<i64: 4, 1>}, {pipeline_mode = #tpu.pipeline_mode<synchronous>, transform_indices = @transform_7, window_bounds = array<i64: 4, 1>}, {pipeline_mode = #tpu.pipeline_mode<synchronous>, transform_indices = @transform_8, window_bounds = array<i64: 1, 288>}, {pipeline_mode = #tpu.pipeline_mode<synchronous>, transform_indices = @transform_9, window_bounds = array<i64: 2, 4, 288>}]} {
    %c0 = arith.constant 0 : index
    %c0_0 = arith.constant 0 : index
    %c0_1 = arith.constant 0 : index
    %0 = vector.load %arg3[%c0, %c0_0, %c0_1] : memref<2x4x1xf32, #tpu.memory_space<vmem>>, vector<2x4x1xf32>
    %cst = arith.constant dense<0.000000e+00> : vector<4x1xf32>
    %1 = vector.multi_reduction <add>, %0, %cst [0] : vector<2x4x1xf32> to vector<4x1xf32>
    %c0_2 = arith.constant 0 : index
    %c0_3 = arith.constant 0 : index
    %c0_4 = arith.constant 0 : index
    %2 = vector.load %arg4[%c0_2, %c0_3, %c0_4] : memref<2x4x1xf32, #tpu.memory_space<vmem>>, vector<2x4x1xf32>
    %cst_5 = arith.constant dense<0.000000e+00> : vector<4x1xf32>
    %3 = vector.multi_reduction <add>, %2, %cst_5 [0] : vector<2x4x1xf32> to vector<4x1xf32>
    %cst_6 = arith.constant 5.120000e+02 : f32
    %4 = vector.broadcast %cst_6 : f32 to vector<4x1xf32>
    %5 = arith.divf %1, %4 : vector<4x1xf32>
    %cst_7 = arith.constant 5.120000e+02 : f32
    %6 = vector.broadcast %cst_7 : f32 to vector<4x1xf32>
    %7 = arith.divf %3, %6 : vector<4x1xf32>
    %8 = arith.mulf %5, %5 : vector<4x1xf32>
    %9 = arith.subf %7, %8 : vector<4x1xf32>
    %cst_8 = arith.constant 0.000000e+00 : f32
    %10 = vector.broadcast %cst_8 : f32 to vector<4x1xf32>
    %11 = arith.maximumf %9, %10 : vector<4x1xf32>
    %c0_9 = arith.constant 0 : index
    %c0_10 = arith.constant 0 : index
    %12 = vector.load %arg5[%c0_9, %c0_10] : memref<4x1xf32, #tpu.memory_space<vmem>>, vector<4x1xf32>
    %cst_11 = arith.constant 9.99999974E-6 : f32
    %13 = vector.broadcast %cst_11 : f32 to vector<4x1xf32>
    %14 = arith.addf %11, %13 : vector<4x1xf32>
    %15 = math.rsqrt %14 : vector<4x1xf32>
    %16 = arith.mulf %12, %15 : vector<4x1xf32>
    %c0_12 = arith.constant 0 : index
    %c0_13 = arith.constant 0 : index
    %17 = vector.load %arg6[%c0_12, %c0_13] : memref<4x1xf32, #tpu.memory_space<vmem>>, vector<4x1xf32>
    %18 = arith.mulf %5, %16 : vector<4x1xf32>
    %19 = arith.subf %17, %18 : vector<4x1xf32>
    %c0_14 = arith.constant 0 : index
    %c0_15 = arith.constant 0 : index
    %c0_16 = arith.constant 0 : index
    %20 = vector.load %arg1[%c0_14, %c0_15, %c0_16] : memref<2x4x288xf32, #tpu.memory_space<vmem>>, vector<2x4x288xf32>
    %21 = vector.shape_cast %16 : vector<4x1xf32> to vector<1x4x1xf32>
    %22 = vector.broadcast %21 : vector<1x4x1xf32> to vector<2x4x288xf32>
    %23 = arith.mulf %20, %22 : vector<2x4x288xf32>
    %24 = vector.shape_cast %19 : vector<4x1xf32> to vector<1x4x1xf32>
    %25 = vector.broadcast %24 : vector<1x4x1xf32> to vector<2x4x288xf32>
    %26 = arith.addf %23, %25 : vector<2x4x288xf32>
    %cst_17 = arith.constant 0.000000e+00 : f32
    %27 = vector.broadcast %cst_17 : f32 to vector<2x4x288xf32>
    %28 = arith.maximumf %26, %27 : vector<2x4x288xf32>
    %c0_18 = arith.constant 0 : index
    %c0_19 = arith.constant 0 : index
    %c0_20 = arith.constant 0 : index
    %29 = vector.load %arg2[%c0_18, %c0_19, %c0_20] : memref<2x4x288xf32, #tpu.memory_space<vmem>>, vector<2x4x288xf32>
    %30 = arith.addf %28, %29 : vector<2x4x288xf32>
    %c0_21 = arith.constant 0 : index
    %c0_22 = arith.constant 0 : index
    %31 = vector.load %arg9[%c0_21, %c0_22] : memref<1x288xf32, #tpu.memory_space<vmem>>, vector<1x288xf32>
    %32 = vector.shape_cast %31 : vector<1x288xf32> to vector<1x1x288xf32>
    %33 = vector.broadcast %32 : vector<1x1x288xf32> to vector<2x4x288xf32>
    %34 = arith.mulf %30, %33 : vector<2x4x288xf32>
    %cst_23 = arith.constant dense<0.000000e+00> : vector<2x4xf32>
    %35 = vector.multi_reduction <add>, %34, %cst_23 [2] : vector<2x4x288xf32> to vector<2x4xf32>
    %36 = vector.shape_cast %35 : vector<2x4xf32> to vector<2x4x1xf32>
    %cst_24 = arith.constant dense<0.000000e+00> : vector<4x1xf32>
    %37 = vector.multi_reduction <add>, %36, %cst_24 [0] : vector<2x4x1xf32> to vector<4x1xf32>
    %38 = arith.mulf %34, %34 : vector<2x4x288xf32>
    %cst_25 = arith.constant dense<0.000000e+00> : vector<2x4xf32>
    %39 = vector.multi_reduction <add>, %38, %cst_25 [2] : vector<2x4x288xf32> to vector<2x4xf32>
    %40 = vector.shape_cast %39 : vector<2x4xf32> to vector<2x4x1xf32>
    %cst_26 = arith.constant dense<0.000000e+00> : vector<4x1xf32>
    %41 = vector.multi_reduction <add>, %40, %cst_26 [0] : vector<2x4x1xf32> to vector<4x1xf32>
    %cst_27 = arith.constant 5.120000e+02 : f32
    %42 = vector.broadcast %cst_27 : f32 to vector<4x1xf32>
    %43 = arith.divf %37, %42 : vector<4x1xf32>
    %cst_28 = arith.constant 5.120000e+02 : f32
    %44 = vector.broadcast %cst_28 : f32 to vector<4x1xf32>
    %45 = arith.divf %41, %44 : vector<4x1xf32>
    %46 = arith.mulf %43, %43 : vector<4x1xf32>
    %47 = arith.subf %45, %46 : vector<4x1xf32>
    %cst_29 = arith.constant 0.000000e+00 : f32
    %48 = vector.broadcast %cst_29 : f32 to vector<4x1xf32>
    %49 = arith.maximumf %47, %48 : vector<4x1xf32>
    %c0_30 = arith.constant 0 : index
    %c0_31 = arith.constant 0 : index
    %50 = vector.load %arg7[%c0_30, %c0_31] : memref<4x1xf32, #tpu.memory_space<vmem>>, vector<4x1xf32>
    %cst_32 = arith.constant 9.99999974E-6 : f32
    %51 = vector.broadcast %cst_32 : f32 to vector<4x1xf32>
    %52 = arith.addf %49, %51 : vector<4x1xf32>
    %53 = math.rsqrt %52 : vector<4x1xf32>
    %54 = arith.mulf %50, %53 : vector<4x1xf32>
    %c0_33 = arith.constant 0 : index
    %c0_34 = arith.constant 0 : index
    %55 = vector.load %arg8[%c0_33, %c0_34] : memref<4x1xf32, #tpu.memory_space<vmem>>, vector<4x1xf32>
    %56 = arith.mulf %43, %54 : vector<4x1xf32>
    %57 = arith.subf %55, %56 : vector<4x1xf32>
    %58 = vector.shape_cast %54 : vector<4x1xf32> to vector<1x4x1xf32>
    %59 = vector.broadcast %58 : vector<1x4x1xf32> to vector<2x4x288xf32>
    %60 = arith.mulf %30, %59 : vector<2x4x288xf32>
    %61 = vector.shape_cast %57 : vector<4x1xf32> to vector<1x4x1xf32>
    %62 = vector.broadcast %61 : vector<1x4x1xf32> to vector<2x4x288xf32>
    %63 = arith.addf %60, %62 : vector<2x4x288xf32>
    %c0_35 = arith.constant 0 : index
    %c0_36 = arith.constant 0 : index
    %c0_37 = arith.constant 0 : index
    %64 = vector.load %arg10[%c0_35, %c0_36, %c0_37] : memref<2x4x288xf32, #tpu.memory_space<vmem>>, vector<2x4x288xf32>
    tpu.vector_store %arg10[%c0_35, %c0_36, %c0_37], %63 {strides = array<i32>} : memref<2x4x288xf32, #tpu.memory_space<vmem>>, vector<2x4x288xf32>,
    return
  }
  func.func @transform_0(%arg0: i32) -> (i32, i32, i32) {
    %c0_i32 = arith.constant 0 : i32
    %c0_i32_0 = arith.constant 0 : i32
    %c0_i32_1 = arith.constant 0 : i32
    %c0_i32_2 = arith.constant 0 : i32
    return %c0_i32, %c0_i32_0, %c0_i32_1 : i32, i32, i32
  }
  func.func @transform_1(%arg0: i32) -> (i32, i32, i32) {
    %c0_i32 = arith.constant 0 : i32
    %c0_i32_0 = arith.constant 0 : i32
    %c0_i32_1 = arith.constant 0 : i32
    %c0_i32_2 = arith.constant 0 : i32
    return %c0_i32, %c0_i32_0, %c0_i32_1 : i32, i32, i32
  }
  func.func @transform_2(%arg0: i32) -> (i32, i32, i32) {
    %c0_i32 = arith.constant 0 : i32
    %c0_i32_0 = arith.constant 0 : i32
    %c0_i32_1 = arith.constant 0 : i32
    %c0_i32_2 = arith.constant 0 : i32
    return %c0_i32, %c0_i32_0, %c0_i32_1 : i32, i32, i32
  }
  func.func @transform_3(%arg0: i32) -> (i32, i32, i32) {
    %c0_i32 = arith.constant 0 : i32
    %c0_i32_0 = arith.constant 0 : i32
    %c0_i32_1 = arith.constant 0 : i32
    %c0_i32_2 = arith.constant 0 : i32
    return %c0_i32, %c0_i32_0, %c0_i32_1 : i32, i32, i32
  }
  func.func @transform_4(%arg0: i32) -> (i32, i32) {
    %c0_i32 = arith.constant 0 : i32
    %c0_i32_0 = arith.constant 0 : i32
    %c0_i32_1 = arith.constant 0 : i32
    return %c0_i32, %c0_i32_0 : i32, i32
  }
  func.func @transform_5(%arg0: i32) -> (i32, i32) {
    %c0_i32 = arith.constant 0 : i32
    %c0_i32_0 = arith.constant 0 : i32
    %c0_i32_1 = arith.constant 0 : i32
    return %c0_i32, %c0_i32_0 : i32, i32
  }
  func.func @transform_6(%arg0: i32) -> (i32, i32) {
    %c0_i32 = arith.constant 0 : i32
    %c0_i32_0 = arith.constant 0 : i32
    %c0_i32_1 = arith.constant 0 : i32
    return %c0_i32, %c0_i32_0 : i32, i32
  }
  func.func @transform_7(%arg0: i32) -> (i32, i32) {
    %c0_i32 = arith.constant 0 : i32
    %c0_i32_0 = arith.constant 0 : i32
    %c0_i32_1 = arith.constant 0 : i32
    return %c0_i32, %c0_i32_0 : i32, i32
  }
  func.func @transform_8(%arg0: i32) -> (i32, i32) {
    %c0_i32 = arith.constant 0 : i32
    %c0_i32_0 = arith.constant 0 : i32
    %c0_i32_1 = arith.constant 0 : i32
    return %c0_i32, %c0_i32_0 : i32, i32
  }
  func.func @transform_9(%arg0: i32) -> (i32, i32, i32) {
    %c0_i32 = arith.constant 0 : i32
    %c0_i32_0 = arith.constant 0 : i32
    %c0_i32_1 = arith.constant 0 : i32
    %c0_i32_2 = arith.constant 0 : i32
    return %c0_i32, %c0_i32_0, %c0_i32_1 : i32, i32, i32
  }
}

</mosaic_0001>

<bundles_post_ra>
// kernel: multi_head_block2.5
= control target key start
LH: loop header
LB: loop body
LE: loop exit
PB: predicated region body
PF: predicated region fallthrough
CT: control target
= control target key end

     0   :  { %vm34_vm0 = vcmask 3072   ;;  %v237_v0 = vmov 0   ;;  %v238_v23 = vmov 839922192   ;;  %v67_v25 = vlaneseq  ;;  %s392_s2 = inlined_call_operand.vmem [shape: f32[2,4,1], index: 2, kind: input, shape index: {}]   ;;  %s393_s3 = inlined_call_operand.vmem [shape: f32[2,4,1], index: 3, kind: input, shape index: {}]   ;;  %s394_s4 = inlined_call_operand.vmem [shape: f32[4,1], index: 4, kind: input, shape index: {}]   ;;  %s395_s5 = inlined_call_operand.vmem [shape: f32[4,1], index: 5, kind: input, shape index: {}]   ;;  %s396_s0 = inlined_call_operand.vmem [shape: f32[2,4,288], index: 0, kind: input, shape index: {}]   ;;  %s397_s8 = inlined_call_operand.vmem [shape: f32[1,288], index: 8, kind: input, shape index: {}]   ;;  %s398_s1 = inlined_call_operand.vmem [shape: f32[2,4,288], index: 1, kind: input, shape index: {}]   ;;  %s399_s6 = inlined_call_operand.vmem [shape: f32[4,1], index: 6, kind: input, shape index: {}]   ;;  %s400_s7 = inlined_call_operand.vmem [shape: f32[4,1], index: 7, kind: input, shape index: {}]   ;;  %s401_s9 = inlined_call_operand.vmem [shape: f32[2,4,288], index: 9, kind: output, shape index: {}]  }
   0x1   :  { %231 = vset.pattern.permute.xlu0 %v237_v0  ;;  %v32_v1 = vld [vmem:[%s392_s2] sm:$0xf]  ;;  %v33_v2 = vld [vmem:[%s392_s2 + $0x4] sm:$0xf]  ;;  %232 = vset.pattern.permute.xlu1 %v237_v0  ;;  %v65_v24 = vunpack.c.l.s4 %v238_v23  ;;  %v57_v35 = vld [vmem:[%s396_s0 + $0x8] sm:$0xf] }
   0x2   :  { %v38_v3 = vld [vmem:[%s393_s3] sm:$0xf]  ;;  %v35_v4 = vsel %vm34_vm0, %v32_v1, 0.0  ;;  %v36_v5 = vsel %vm34_vm0, %v33_v2, 0.0  ;;  %v39_v6 = vld [vmem:[%s393_s3 + $0x4] sm:$0xf] }
   0x3   :  { %v40_v7 = vsel %vm34_vm0, %v38_v3, 0.0  ;;  %v37_v8 = vadd.f32 %v36_v5, %v35_v4  ;;  %v41_v9 = vsel %vm34_vm0, %v39_v6, 0.0  ;;  %v49_v17 = vld [vmem:[%s394_s4] sm:$0xf]  ;;  %v66_v26 = vunpack.c.0.s8 %v65_v24  ;;  %v58_v36 = vld [vmem:[%s396_s0 + $0xc] sm:$0xff] }
   0x4   :  { %v42_v10 = vadd.f32 %v41_v9, %v40_v7  ;;  %v53_v20 = vld [vmem:[%s395_s5] sm:$0xf]  ;;  %v68_v27 = vshrl.u32 %v67_v25, 7  ;;  %v59_v37 = vld [vmem:[%s396_s0 + $0x14] sm:$0xf]  ;;  %v98_v54 = vld [vmem:[%s398_s1 + $0xc] sm:$0xff] }
   0x5   :  { %v44_v11 = vmul.f32 0.001953125, %v37_v8  ;;  %v56_v32 = vld [vmem:[%s396_s0] sm:$0xff]  ;;  %v97_v52 = vld [vmem:[%s398_s1 + $0x8] sm:$0xf]  ;;  %v99_v62 = vld [vmem:[%s398_s1 + $0x14] sm:$0xf] }
   0x6   :  { %v45_v12 = vmul.f32 0.001953125, %v42_v10  ;;  %v307_v28 = vsub.s32 %v66_v26, %v68_v27  ;;  %v108_v30 = vsub.s32 0, %v68_v27  ;;  %v112_v31 = vsub.s32 1, %v68_v27  ;;  %v104_v34 = vld [vmem:[%s397_s8] sm:$0x7] }
   0x7   :  { %v46_v13 = vmul.f32 %v44_v11, %v44_v11  ;;  %v116_v42 = vsub.s32 2, %v68_v27  ;;  %v96_v51 = vld [vmem:[%s398_s1] sm:$0xff]  ;;  %vm131_vm1 = vcmask 1043456   ;;  %vm135_vm2 = vcmask 257024  }
   0x8   :  { %v109_v40 = vrot.slane %v104_v34, %v108_v30  ;;  %v113_v41 = vrot.slane %v104_v34, %v112_v31 }
   0x9   :  { %v47_v14 = vsub.f32 %v45_v12, %v46_v13  ;;  %v117_v53 = vrot.slane %v104_v34, %v116_v42 }
   0xa   :  { %v119_v58 = vcombine.low %v109_v40, %v113_v41 }
   0xb   :  { %v48_v15 = vmax.f32 %v47_v14, 0.0 }
   0xd   :  { %v50_v16 = vadd.f32 1e-05, %v48_v15 }
   0xf   :  { %233 = vrsqrt.f32 %v50_v16 }
  0x1c   :  { %v234_v18 = vpop.eup %233 }
  0x1d   :  { %v52_v19 = vmul.f32 %v234_v18, %v49_v17 }
  0x1f   :  { %62 = vperm.xlu0 %231, %v52_v19   ;;  %v54_v21 = vmul.f32 %v52_v19, %v44_v11 }
  0x21   :  { %v55_v22 = vsub.f32 %v53_v20, %v54_v21 }
  0x23   :  { %78 = vperm.xlu0 %231, %v55_v22  }
  0x9a   :  { %v63_v29 = vpop.permute.xlu0 %62 }
  0x9b   :  { %v70_v33 = vrot.slane %v63_v29, %v307_v28 }
  0x9d   :  { %v72_v38 = vmul.f32 %v70_v33, %v56_v32  ;;  %v73_v43 = vmul.f32 %v70_v33, %v57_v35  ;;  %v74_v44 = vmul.f32 %v70_v33, %v58_v36  ;;  %v75_v45 = vmul.f32 %v70_v33, %v59_v37 }
  0x9e   :  { %v79_v39 = vpop.permute.xlu0 %78 }
  0x9f   :  { %v86_v46 = vrot.slane %v79_v39, %v307_v28 }
  0xa1   :  { %v88_v47 = vadd.f32 %v86_v46, %v72_v38  ;;  %v90_v48 = vadd.f32 %v86_v46, %v74_v44  ;;  %v91_v49 = vadd.f32 %v86_v46, %v75_v45  ;;  %v89_v50 = vadd.f32 %v86_v46, %v73_v43 }
  0xa3   :  { %v92_v55 = vmax.f32 %v88_v47, 0.0  ;;  %v94_v56 = vmax.f32 %v90_v48, 0.0  ;;  %v93_v57 = vmax.f32 %v89_v50, 0.0  ;;  %v95_v59 = vmax.f32 %v91_v49, 0.0  ;;  %v182_v50 = vld [vmem:[%s399_s6] sm:$0xf] }
  0xa5   :  { %v335_v60 = vadd.f32 %v96_v51, %v92_v55  ;;  %v337_v61 = vadd.f32 %v97_v52, %v93_v57  ;;  %v342_v63 = vadd.f32 %v98_v54, %v94_v56  ;;  %v347_v3 = vadd.f32 %v99_v62, %v95_v59 }
  0xa7   :  { %v121_v0 = vmul.f32 %v119_v58, %v335_v60  ;;  %v122_v1 = vmul.f32 %v117_v53, %v337_v61  ;;  %v123_v2 = vmul.f32 %v119_v58, %v342_v63  ;;  %v124_v14 = vmul.f32 %v117_v53, %v347_v3  ;;  %v186_v53 = vld [vmem:[%s400_s7] sm:$0xf] }
  0xa9   :  { %v127_v4 = vcombine.high %v121_v0, %v121_v0  ;;  %v150_v5 = vmul.f32 %v121_v0, %v121_v0  ;;  %v132_v6 = vsel %vm131_vm1, %v121_v0, 0.0  ;;  %v128_v7 = vcombine.high %v123_v2, %v123_v2 }
  0xaa   :  { %v151_v9 = vmul.f32 %v122_v1, %v122_v1  ;;  %v152_v11 = vmul.f32 %v123_v2, %v123_v2  ;;  %v136_v13 = vsel %vm135_vm2, %v122_v1, 0.0  ;;  %v140_v18 = vsel %vm131_vm1, %v123_v2, 0.0 }
  0xab   :  { %v133_v8 = vsel %vm131_vm1, %v127_v4, 0.0  ;;  %v156_v10 = vcombine.high %v150_v5, %v150_v5  ;;  %v141_v15 = vsel %vm131_vm1, %v128_v7, 0.0  ;;  %v160_v16 = vsel %vm131_vm1, %v150_v5, 0.0 }
  0xac   :  { %v134_v12 = vadd.f32 %v133_v8, %v132_v6  ;;  %v157_v19 = vcombine.high %v152_v11, %v152_v11  ;;  %v142_v22 = vadd.f32 %v141_v15, %v140_v18  ;;  %v163_v23 = vsel %vm135_vm2, %v151_v9, 0.0 }
  0xad   :  { %v161_v17 = vsel %vm131_vm1, %v156_v10, 0.0  ;;  %v143_v26 = vsel %vm135_vm2, %v124_v14, 0.0  ;;  %v153_v27 = vmul.f32 %v124_v14, %v124_v14  ;;  %v167_v29 = vsel %vm131_vm1, %v152_v11, 0.0 }
  0xae   :  { %v137_v20 = vadd.f32 %v136_v13, %v134_v12  ;;  %v162_v21 = vadd.f32 %v161_v17, %v160_v16  ;;  %v168_v24 = vsel %vm131_vm1, %v157_v19, 0.0  ;;  %v144_v30 = vadd.f32 %v143_v26, %v142_v22 }
  0xaf   :  { %v169_v31 = vadd.f32 %v168_v24, %v167_v29  ;;  %v170_v32 = vsel %vm135_vm2, %v153_v27, 0.0 }
  0xb0   :  { %138 = vadd.xlane.f32.xlu1 %v137_v20  ;;  %v164_v25 = vadd.f32 %v163_v23, %v162_v21 }
  0xb1   :  { %v171_v33 = vadd.f32 %v170_v32, %v169_v31 }
  0xb2   :  { %165 = vadd.xlane.f32.xlu0 %v164_v25 }
  0xb4   :  { %145 = vadd.xlane.f32.xlu1 %v144_v30 }
  0xb8   :  { %172 = vadd.xlane.f32.xlu1 %v171_v33 }
 0x139   :  { %v139_v34 = vpop.xlane.xlu1 %138 }
 0x13a   :  { %v147_v36 = vsel %vm131_vm1, %v139_v34, 0.0 }
 0x13b   :  { %v166_v38 = vpop.xlane.xlu0 %165 }
 0x13c   :  { %v174_v42 = vsel %vm131_vm1, %v166_v38, 0.0 }
 0x13d   :  { %v146_v35 = vpop.xlane.xlu1 %145 }
 0x13e   :  { %v148_v37 = vsel %vm131_vm1, %v146_v35, 0.0 }
 0x13f   :  { %v149_v39 = vadd.f32 %v148_v37, %v147_v36 }
 0x141   :  { %v177_v40 = vmul.f32 0.001953125, %v149_v39  ;;  %v173_v41 = vpop.xlane.xlu1 %172 }
 0x142   :  { %v175_v43 = vsel %vm131_vm1, %v173_v41, 0.0 }
 0x143   :  { %v176_v44 = vadd.f32 %v175_v43, %v174_v42  ;;  %v179_v45 = vmul.f32 %v177_v40, %v177_v40 }
 0x145   :  { %v178_v46 = vmul.f32 0.001953125, %v176_v44 }
 0x147   :  { %v180_v47 = vsub.f32 %v178_v46, %v179_v45 }
 0x149   :  { %v181_v48 = vmax.f32 %v180_v47, 0.0 }
 0x14b   :  { %v183_v49 = vadd.f32 1e-05, %v181_v48 }
 0x14d   :  { %235 = vrsqrt.f32 %v183_v49 }
 0x15a   :  { %v236_v51 = vpop.eup %235 }
 0x15b   :  { %v185_v52 = vmul.f32 %v236_v51, %v182_v50 }
 0x15d   :  { %191 = vperm.xlu1 %232, %v185_v52   ;;  %v187_v54 = vmul.f32 %v185_v52, %v177_v40 }
 0x15f   :  { %v188_v55 = vsub.f32 %v186_v53, %v187_v54 }
 0x161   :  { %207 = vperm.xlu1 %232, %v188_v55  }
 0x1d8   :  { %v192_v56 = vpop.permute.xlu1 %191 }
 0x1d9   :  { %v199_v57 = vrot.slane %v192_v56, %v307_v28 }
 0x1db   :  { %v201_v58 = vmul.f32 %v199_v57, %v335_v60  ;;  %v202_v62 = vmul.f32 %v199_v57, %v337_v61  ;;  %v203_v0 = vmul.f32 %v199_v57, %v342_v63  ;;  %v204_v1 = vmul.f32 %v199_v57, %v347_v3 }
 0x1dc   :  { %v208_v59 = vpop.permute.xlu1 %207 }
 0x1dd   :  { %v215_v2 = vrot.slane %v208_v59, %v307_v28 }
 0x1df   :  { %v217_v4 = vadd.f32 %v215_v2, %v201_v58  ;;  %v218_v5 = vadd.f32 %v215_v2, %v202_v62  ;;  %v219_v6 = vadd.f32 %v215_v2, %v203_v0  ;;  %v220_v7 = vadd.f32 %v215_v2, %v204_v1 }
 0x1e1   :  { %221 = vst [vmem:[%s401_s9] sm:$0xff] %v217_v4  ;;  %222 = vst.msk [vmem:[%s401_s9 + $0x8] sm:$0xf] %vm135_vm2, %v218_v5 }
 0x1e2   :  { %223 = vst [vmem:[%s401_s9 + $0xc] sm:$0xff] %v219_v6  ;;  %224 = vst.msk [vmem:[%s401_s9 + $0x14] sm:$0xf] %vm135_vm2, %v220_v7 }

// kernel: multi_head_block2.3
= control target key start
LH: loop header
LB: loop body
LE: loop exit
PB: predicated region body
PF: predicated region fallthrough
CT: control target
= control target key end

     0   :  { %s964_s18 = smov 0   ;;  %s1058_s0 = inlined_call_operand.vmem [shape: bf16[2,4,384], index: 0, kind: input, shape index: {}]   ;;  %s1059_s1 = inlined_call_operand.vmem [shape: bf16[8,36], index: 1, kind: input, shape index: {}]   ;;  %s1060_s2 = inlined_call_operand.vmem [shape: f32[1,288], index: 2, kind: input, shape index: {}]   ;;  %s1061_s3 = inlined_call_operand.vmem [shape: bf16[2,8,288], index: 3, kind: output, shape index: {0}]   ;;  %s1062_s4 = inlined_call_operand.vmem [shape: f32[2,8,1], index: 4, kind: output, shape index: {1}]   ;;  %s1063_s5 = inlined_call_operand.vmem [shape: f32[2,8,1], index: 5, kind: output, shape index: {2}]  }
   0x1 LB: > { %s830_s19 = sadd.s32 4294967295, %s920_s18   ;;  %p834_p0 = scmp.ge.s32.totalorder %s920_s18, 1  ;;  %s920_s18 = sphi %s964_s18, %s16_s18  }
   0x2   : > { %p192_p1 = scmp.lt.s32.totalorder %s920_s18, 3 }
   0x4   : > { %p193_p2 = pnand %p834_p0, %p192_p1 }
   0x5   : > { %p228_p3 = scmp.lt.s32.totalorder (!%p193_p2), %s830_s19, 1  ;;  %s923_s24 = smov (!%p193_p2), 90  }
   0x6   : > { %196 = sbr.rel (%p193_p2) target bundleno = 525 (0x20d), region = 32  ;;  %s924_s25 = smov (!%p193_p2), 109  }
   0x7   : > { %s925_s26 = smov (!%p193_p2), 92   ;;  %s926_s27 = smov (!%p193_p2), 108  }
   0x8   : > { %s928_s28 = smov (!%p193_p2), 91   ;;  %s929_s29 = smov (!%p193_p2), 127  }
   0x9   : > { %s930_s30 = smov (!%p193_p2), 126   ;;  %s931_s6 = smov (!%p193_p2), 110  }
   0xb   : > { %v260_v0 = vlaneseq  ;;  %v922_v1 = vmov 1983009808   ;;  %s1065_s19 = smov (!%p228_p3, %s830_s19), 1  ;;  %vm267_vm0 = vcmask 254976   ;;  %v927_v24 = vmov 0.0  }
   0xc   : > { %v258_v2 = vunpack.c.l.s4 %v922_v1  ;;  %s872_s20 = smul.u32 6, %s1065_s19  ;;  %862 = vmatprep.subr.bf16.mxu1 %v927_v24  ;;  %vm932_vm1 = vmmov 0   ;;  %v933_v42 = vmov 0   ;;  %vm299_vm2 = vcmask 257026   ;;  %s837_s15 = sshll.u32 %s1065_s19, 3 }
   0xd   : > { %v974_v3 = vshrl.u32 %v260_v0, 7  ;;  %868 = vmatprep.mubr.msk.bf16.mxu1 %vm932_vm1, %v927_v24  ;;  %608 = vmatprep.mubr.bf16.mxu0 %v933_v42  ;;  %vm292_vm3 = vcmask 1043456   ;;  %vm505_vm4 = vcmask 736256   ;;  %vm385_vm5 = vcmask 891904   ;;  %v657_v42 = vld [vmem:[%s1060_s2] sm:$0x7] }
   0xe   : > { %v259_v4 = vunpack.c.0.s8 %v258_v2  ;;  %s983_s23 = scalar_lea.vmem %s1058_s0, %s872_s20  ;;  %vm415_vm6 = vcmask 883712   ;;  %vm445_vm7 = vcmask 752640   ;;  %vm566_vm8 = vcmask 1041408   ;;  %s873_s11 = smul.u32 12, %s1065_s19 }
   0xf   : > { %v481_v6 = vld [vmem:[%s983_s23] sm:$0x3f]  ;;  %vm475_vm9 = vcmask 744448   ;;  %vm294_vm10 = vcmask 1039360   ;;  %vm325_vm11 = vcmask 1031168   ;;  %vm355_vm12 = vcmask 900096   ;;  %s241_s20 = scalar_lea.vmem %s1062_s4, %s837_s15 }
  0x10   : > { %v978_v5 = vsub.s32 %v259_v4, %v974_v3  ;;  %v361_v7 = vld [vmem:[%s983_s23] sm:$0x3f]  ;;  %v483_v12 = vcombine.high %v481_v6, %v481_v6  ;;  %vm562_vm13 = vcmask 293888   ;;  %s237_s14 = scalar_lea.vmem %s1061_s3, %s873_s11  ;;  %vm691_vm14 = vcmask 257024  }
  0x11   : > { %v421_v8 = vld [vmem:[%s983_s23] sm:$0x3f]  ;;  %v363_v14 = vcombine.high %v361_v7, %v361_v7  ;;  %vm697_vm15 = vcmask 261120  }
  0x12   : > { %v490_v9 = vrot.slane %v481_v6, %v978_v5  ;;  %v370_v10 = vrot.slane %v361_v7, %v978_v5  ;;  %v391_v11 = vld [vmem:[%s983_s23] sm:$0x3f]  ;;  %v430_v15 = vrot.slane %v421_v8, %v978_v5  ;;  %v497_v19 = vrot.slane %v483_v12, %v978_v5 }
  0x13   : > { %v247_v13 = vld [vmem:[%s983_s23] sm:$0x3f]  ;;  %v407_v16 = vrot.slane %v391_v11, %v978_v5  ;;  %v393_v17 = vcombine.low %v391_v11, %v391_v11  ;;  %v377_v20 = vrot.slane %v363_v14, %v978_v5  ;;  %v423_v21 = vcombine.high %v421_v8, %v421_v8 }
  0x14   : > { %498 = vrot.lane.b32.xlu0 %v490_v9, %s923_s24  ;;  %378 = vrot.lane.b32.xlu1 %v370_v10, %s924_s25  ;;  %839 = vst.sshfl [vmem:[#allocation2] sm:$0xf pattern:$0x76325410] %v247_v13  ;;  %v249_v18 = vcombine.high %v247_v13, %v247_v13  ;;  %v451_v22 = vld [vmem:[%s983_s23] sm:$0x3f] }
  0x15   : > { %v400_v25 = vrot.slane %v393_v17, %v978_v5  ;;  %v437_v26 = vrot.slane %v423_v21, %v978_v5  ;;  %v453_v27 = vcombine.low %v451_v22, %v451_v22  ;;  %v269_v28 = vld [vmem:[%s983_s23] sm:$0x3f]  ;;  %v467_v30 = vrot.slane %v451_v22, %v978_v5 }
  0x16   : > { %v263_v23 = vrot.slane %v249_v18, %v978_v5  ;;  %v271_v31 = vcombine.low %v269_v28, %v269_v28  ;;  %v301_v32 = vld [vmem:[%s983_s23] sm:$0x3f]  ;;  %v285_v33 = vrot.slane %v269_v28, %v978_v5 }
  0x17   : > { %v460_v29 = vrot.slane %v453_v27, %v978_v5  ;;  %v303_v35 = vcombine.high %v301_v32, %v301_v32  ;;  %v331_v36 = vld [vmem:[%s983_s23] sm:$0x3f]  ;;  %v310_v38 = vrot.slane %v301_v32, %v978_v5  ;;  %s245_s23 = scalar_lea.vmem %s1063_s5, %s837_s15 }
  0x18   : > { %438 = vrot.lane.b32.xlu0 %v430_v15, %s925_s26  ;;  %410 = vrot.lane.b32.xlu1 %v407_v16, %s926_s27  ;;  %268 = vst.msk [vmem:[#allocation2 + $0x8] sm:$0x3] %vm267_vm0, %v263_v23  ;;  %v278_v34 = vrot.slane %v271_v31, %v978_v5  ;;  %v333_v39 = vcombine.low %v331_v36, %v331_v36 }
  0x19   : > { %v317_v37 = vrot.slane %v303_v35, %v978_v5  ;;  %v347_v40 = vrot.slane %v331_v36, %v978_v5 }
  0x1a   : > { %v340_v41 = vrot.slane %v333_v39, %v978_v5 }
  0x1c   : > { %500 = vrot.lane.b32.xlu0 %v497_v19, %s923_s24  ;;  %380 = vrot.lane.b32.xlu1 %v377_v20, %s924_s25 }
  0x20   : > { %408 = vrot.lane.b32.xlu0 %v400_v25, %s926_s27  ;;  %440 = vrot.lane.b32.xlu1 %v437_v26, %s925_s26 }
  0x24   : > { %468 = vrot.lane.b32.xlu0 %v460_v29, %s928_s28  ;;  %470 = vrot.lane.b32.xlu1 %v467_v30, %s928_s28 }
  0x28   : > { %288 = vrot.lane.b32.xlu1 %v285_v33, %s929_s29  ;;  %286 = vrot.lane.b32.xlu0 %v278_v34, %s929_s29 }
  0x2c   : > { %320 = vrot.lane.b32.xlu1 %v317_v37, %s930_s30  ;;  %318 = vrot.lane.b32.xlu0 %v310_v38, %s930_s30 }
  0x30   : > { %350 = vrot.lane.b32.xlu1 %v347_v40, %s931_s6  ;;  %348 = vrot.lane.b32.xlu0 %v340_v41, %s931_s6  ;;  %v669_v41 = vsub.s32 2, %v974_v3 }
  0x86   : > { %v499_v43 = vpop.permute.xlu0 %498  ;;  %v379_v44 = vpop.permute.xlu1 %378 }
  0x87   : > { %v502_v49 = vrot.slane %v499_v43, 4  ;;  %v382_v50 = vrot.slane %v379_v44, 4 }
  0x8a   : > { %v439_v45 = vpop.permute.xlu0 %438  ;;  %v411_v46 = vpop.permute.xlu1 %410 }
  0x8b   : > { %420 = vst.msk [vmem:[#allocation2 + $0x20] sm:$0xc] %vm299_vm2, %v411_v46  ;;  %v442_v59 = vrot.slane %v439_v45, 4  ;;  %v413_v60 = vrot.slane %v411_v46, 4  ;;  %v665_v46 = vsub.s32 1, %v974_v3 }
  0x8e   : > { %v501_v47 = vpop.permute.xlu0 %500  ;;  %v381_v48 = vpop.permute.xlu1 %380 }
  0x8f   : > { %v503_v51 = vrot.slane %v501_v47, 4  ;;  %510 = vst.msk [vmem:[#allocation2 + $0x38] sm:$0x3] %vm267_vm0, %v501_v47  ;;  %v383_v52 = vrot.slane %v381_v48, 4  ;;  %390 = vst.msk [vmem:[#allocation2 + $0x20] sm:$0x3] %vm267_vm0, %v381_v48 }
  0x91   : > { %v504_v53 = vsel %vm292_vm3, %v502_v49, %v503_v51  ;;  %v384_v54 = vsel %vm292_vm3, %v382_v50, %v383_v52  ;;  %v666_v52 = vrot.slane %v657_v42, %v665_v46 }
  0x92   : > { %v506_v55 = vsel %vm505_vm4, %v499_v43, %v504_v53  ;;  %v386_v56 = vsel %vm385_vm5, %v379_v44, %v384_v54  ;;  %v409_v57 = vpop.permute.xlu0 %408  ;;  %v441_v58 = vpop.permute.xlu1 %440  ;;  %v670_v43 = vrot.slane %v657_v42, %v669_v41  ;;  %v661_v44 = vsub.s32 0, %v974_v3 }
  0x93   : > { %509 = vst [vmem:[#allocation2 + $0x30] sm:$0x33] %v506_v55  ;;  %389 = vst [vmem:[#allocation2 + $0x18] sm:$0x33] %v386_v56  ;;  %v412_v61 = vrot.slane %v409_v57, 4  ;;  %v443_v62 = vrot.slane %v441_v58, 4 }
  0x94   : > { %450 = vst.msk [vmem:[#allocation2 + $0x2c] sm:$0x3] %vm267_vm0, %v441_v58  ;;  %v662_v49 = vrot.slane %v657_v42, %v661_v44 }
  0x95   : > { %v414_v63 = vsel %vm292_vm3, %v412_v61, %v413_v60  ;;  %v444_v0 = vsel %vm292_vm3, %v442_v59, %v443_v62 }
  0x96   : > { %v416_v1 = vsel %vm415_vm6, %v409_v57, %v414_v63  ;;  %v446_v2 = vsel %vm445_vm7, %v439_v45, %v444_v0  ;;  %v469_v4 = vpop.permute.xlu0 %468  ;;  %v471_v5 = vpop.permute.xlu1 %470  ;;  %v903_v6 = vld [vmem:[#allocation2 + $0x38] ss:$0 sps:$4 sm:$0x33]  }
  0x97   : > { %419 = vst [vmem:[#allocation2 + $0x18] sm:$0xcc] %v416_v1  ;;  %449 = vst [vmem:[#allocation2 + $0x24] sm:$0x33] %v446_v2  ;;  %v472_v7 = vrot.slane %v469_v4, 4  ;;  %v473_v8 = vrot.slane %v471_v5, 4 }
  0x98   : > { %480 = vst.msk [vmem:[#allocation2 + $0x2c] sm:$0xc] %vm299_vm2, %v471_v5  ;;  %v574_v9 = vsel %vm566_vm8, %v903_v6, 0 }
  0x99   : > { %v474_v10 = vsel %vm292_vm3, %v472_v7, %v473_v8  ;;  %863 = vmatpush3.bf16.msra.mxu1 %v574_v9 }
  0x9a   : > { %v476_v11 = vsel %vm475_vm9, %v469_v4, %v474_v10  ;;  %v289_v12 = vpop.permute.xlu1 %288  ;;  %v287_v13 = vpop.permute.xlu0 %286  ;;  %v520_v14 = vld [vmem:[#allocation2 + $0x30] sm:$0x33]  ;;  %864 = vmatprep.subr.bf16.mxu1 %v927_v24 }
  0x9b   : > { %479 = vst [vmem:[#allocation2 + $0x24] sm:$0xcc] %v476_v11  ;;  %v291_v15 = vrot.slane %v289_v12, 4  ;;  %300 = vst.msk [vmem:[#allocation2 + $0x8] sm:$0xc] %vm299_vm2, %v289_v12  ;;  %v290_v16 = vrot.slane %v287_v13, 4  ;;  %v847_v17 = vcombine.high %v520_v14, %v520_v14  ;;  %v846_v18 = vcombine.low %v520_v14, %v520_v14 }
  0x9d   : > { %v293_v19 = vsel %vm292_vm3, %v290_v16, %v291_v15  ;;  %849 = vmatprep.subr.msk.bf16.mxu0 %vm566_vm8, %v847_v17  ;;  %v568_v20 = vsel %vm566_vm8, %v846_v18, 0 }
  0x9e   : > { %v295_v21 = vsel %vm294_vm10, %v287_v13, %v293_v19  ;;  %587 = vmatpush1.bf16.msra.mxu0 %v568_v20  ;;  %v321_v22 = vpop.permute.xlu1 %320  ;;  %v319_v23 = vpop.permute.xlu0 %318 }
  0x9f   : > { %v906_v25 = vld [vmem:[#allocation2 + $0x20] ss:$12 sps:$4 sm:$0xff]   ;;  %298 = vst [vmem:[#allocation2] sm:$0xcc] %v295_v21  ;;  %v323_v26 = vrot.slane %v321_v22, 4  ;;  %v322_v27 = vrot.slane %v319_v23, 4 }
  0xa0   : > { %330 = vst.msk [vmem:[#allocation2 + $0x14] sm:$0x3] %vm267_vm0, %v321_v22  ;;  %865 = vmatpush3.bf16.msra.mxu1 %v906_v25  ;;  %vm702_vm0 = vcmask 7168  }
  0xa1   : > { %v324_v28 = vsel %vm292_vm3, %v322_v27, %v323_v26  ;;  %866 = vmatprep.subr.bf16.mxu1 %v927_v24  ;;  %v511_v24 = vld [vmem:[%s1059_s1] sm:$0xf] }
  0xa2   : > { %v326_v29 = vsel %vm325_vm11, %v319_v23, %v324_v28  ;;  %v351_v30 = vpop.permute.xlu1 %350  ;;  %v349_v31 = vpop.permute.xlu0 %348  ;;  %v907_v32 = vld [vmem:[#allocation2 + $0x1c] ss:$12 sps:$4 sm:$0xff]   ;;  %v909_v33 = vld [vmem:[#allocation2 + $0x18] ss:$12 sps:$4 sm:$0xff]  }
  0xa3   : > { %329 = vst [vmem:[#allocation2 + $0xc] sm:$0x33] %v326_v29  ;;  %v353_v34 = vrot.slane %v351_v30, 4  ;;  %360 = vst.msk [vmem:[#allocation2 + $0x14] sm:$0xc] %vm299_vm2, %v351_v30  ;;  %v352_v35 = vrot.slane %v349_v31, 4  ;;  %588 = vmatprep.subr.bf16.mxu0 %v907_v32 }
  0xa4   : > { %589 = vmatpush1.bf16.msra.mxu0 %v909_v33 }
  0xa5   : > { %v354_v36 = vsel %vm292_vm3, %v352_v35, %v353_v34 }
  0xa6   : > { %v356_v37 = vsel %vm355_vm12, %v349_v31, %v354_v36 }
  0xa7   : > { %359 = vst [vmem:[#allocation2 + $0xc] sm:$0xcc] %v356_v37 }
  0xaa   : > { %v910_v38 = vld [vmem:[#allocation2 + $0x8] ss:$12 sps:$4 sm:$0xff]  }
  0xab   : > { %867 = vmatpush3.bf16.msra.mxu1 %v910_v38 }
  0xae   : > { %v911_v39 = vld [vmem:[#allocation2 + $0x4] ss:$12 sps:$4 sm:$0xff]   ;;  %v913_v40 = vld [vmem:[#allocation2] ss:$12 sps:$4 sm:$0xff]   ;;  %869 = vmatmul.mubr.msk.bf16.vlgmr.msra.gmra.mxu1 %vm562_vm13, %v511_v24 }
  0xaf   : > { %590 = vmatprep.subr.bf16.mxu0 %v911_v39 }
  0xb0   : > { %591 = vmatpush1.bf16.msra.mxu0 %v913_v40 }
  0xb3   : > { %850 = vmatmul.mubr.msk.bf16.vlgmr.msra.gmra.mxu0 %vm562_vm13, %v511_v24 }
 0x16e   : > { %v651_v45 = vpop.f32.mrf.mxu1 }
 0x16f   : > { %v676_v47 = vmul.f32 %v670_v43, %v651_v45 }
 0x170   : > { %v870_v48 = vpop.f32.mrf.mxu1 }
 0x171   : > { %v679_v50 = vpack.c.bf16 %v676_v47, %v676_v47 }
 0x172   : > { %v654_v51 = vpop.f32.mrf.mxu1 }
 0x173   : > { %692 = vst.msk [vmem:[%s237_s14 + $0x8] sm:$0xf] %vm691_vm14, %v679_v50  ;;  %v610_v53 = vpop.f32.mrf.mxu0  ;;  %v695_v56 = vunpack.c.l.bf16 %v679_v50 }
 0x174   : > { %v674_v54 = vmul.f32 %v662_v49, %v610_v53  ;;  %v871_v55 = vpop.f32.mrf.mxu1 }
 0x175   : > { %v612_v57 = vpop.f32.mrf.mxu0  ;;  %v706_v0 = vmul.f32 %v695_v56, %v695_v56  ;;  %v698_v2 = vsel %vm697_vm15, %v695_v56, 0.0 }
 0x176   : > { %v677_v58 = vpack.c.bf16 %v674_v54, %v674_v54  ;;  %v675_v59 = vmul.f32 %v666_v52, %v612_v57 }
 0x177   : > { %v614_v3 = vpop.f32.mrf.mxu0  ;;  %v708_v7 = vsel %vm697_vm15, %v706_v0, 0.0 }
 0x178   : > { %v693_v60 = vunpack.c.l.bf16 %v677_v58  ;;  %v678_v61 = vpack.c.bf16 %v675_v59, %v675_v59  ;;  %v856_v62 = vpack.c.bf16 %v675_v59, %v674_v54 }
 0x179   : > { %v615_v63 = vpop.f32.mrf.mxu0 }
 0x17a   : > { %690 = vst [vmem:[%s237_s14] sm:$0xff] %v856_v62  ;;  %v694_v1 = vunpack.c.l.bf16 %v678_v61  ;;  %v704_v4 = vmul.f32 %v693_v60, %v693_v60 }
 0x17c   : > { %v705_v5 = vmul.f32 %v694_v1, %v694_v1  ;;  %v696_v6 = vadd.f32 %v694_v1, %v693_v60 }
 0x17e   : > { %v699_v8 = vadd.f32 %v698_v2, %v696_v6  ;;  %v707_v9 = vadd.f32 %v705_v5, %v704_v4 }
 0x180   : > { %700 = vadd.xlane.f32.xlu0 %v699_v8  ;;  %v709_v10 = vadd.f32 %v708_v7, %v707_v9 }
 0x182   : > { %710 = vadd.xlane.f32.xlu1 %v709_v10 }
 0x209   : > { %v701_v11 = vpop.xlane.xlu0 %700 }
 0x20a   : > { %703 = vst.msk [vmem:[%s241_s20] sm:$0xff] %vm702_vm0, %v701_v11 }
 0x20b   : > { %v711_v12 = vpop.xlane.xlu1 %710 }
 0x20c   : > { %712 = vst.msk [vmem:[%s245_s23] sm:$0xff] %vm702_vm0, %v711_v12 }
 0x20d PF: > { %s16_s18 = sadd.s32 1, %s920_s18  }
 0x20e   : > { %p13_p4 = scmp.ge.s32.totalorder %s16_s18, 4  }
 0x210   :  { %15 = sbr.rel (!%p13_p4) target bundleno = 1 (0x1), region = 86 }

// kernel: multi_head_block2.4
= control target key start
LH: loop header
LB: loop body
LE: loop exit
PB: predicated region body
PF: predicated region fallthrough
CT: control target
= control target key end

     0   :  { %s1097_s30 = smov 0   ;;  %s1221_s0 = inlined_call_operand.vmem [shape: bf16[2,8,288], index: 0, kind: input, shape index: {}]   ;;  %s1222_s1 = inlined_call_operand.vmem [shape: f32[2,8,1], index: 1, kind: input, shape index: {}]   ;;  %s1223_s2 = inlined_call_operand.vmem [shape: f32[2,8,1], index: 2, kind: input, shape index: {}]   ;;  %s1224_s3 = inlined_call_operand.vmem [shape: f32[8,1], index: 3, kind: input, shape index: {}]   ;;  %s1225_s4 = inlined_call_operand.vmem [shape: f32[8,1], index: 4, kind: input, shape index: {}]   ;;  %s1226_s5 = inlined_call_operand.vmem [shape: bf16[4,72], index: 5, kind: input, shape index: {}]   ;;  %s1227_s6 = inlined_call_operand.vmem [shape: f32[1,288], index: 6, kind: input, shape index: {}]   ;;  %s1228_s7 = inlined_call_operand.vmem [shape: f32[2,4,288], index: 7, kind: output, shape index: {0}]   ;;  %s1229_s8 = inlined_call_operand.vmem [shape: f32[2,4,1], index: 8, kind: output, shape index: {1}]   ;;  %s1230_s9 = inlined_call_operand.vmem [shape: f32[2,4,1], index: 9, kind: output, shape index: {2}]  }
   0x1 LB: > { %s945_s10 = sadd.s32 4294967295, %s1033_s30   ;;  %p949_p0 = scmp.ge.s32.totalorder %s1033_s30, 1  ;;  %s1033_s30 = sphi %s1097_s30, %s20_s30  }
   0x2   : > { %p292_p1 = scmp.lt.s32.totalorder %s1033_s30, 3 }
   0x4   : > { %p293_p2 = pnand %p949_p0, %p292_p1 }
   0x5   : > { %p336_p3 = scmp.lt.s32.totalorder (!%p293_p2), %s945_s10, 1  ;;  %s1036_s29 = smov (!%p293_p2), 19  }
   0x6   : > { %296 = sbr.rel (%p293_p2) target bundleno = 802 (0x322), region = 48  ;;  %s1037_s11 = smov (!%p293_p2), 90  }
   0x7   : > { %s1039_s12 = smov (!%p293_p2), 92   ;;  %s1040_s13 = smov (!%p293_p2), 91  }
   0x8   : > { %s1041_s14 = smov (!%p293_p2), 109   ;;  %s1042_s15 = smov (!%p293_p2), 108  }
   0x9   : > { %s1043_s16 = smov (!%p293_p2), 126   ;;  %s1044_s17 = smov (!%p293_p2), 110  }
   0xa   : > { %s1046_s18 = smov (!%p293_p2), 127  }
   0xb   : > { %v355_v0 = vld [vmem:[%s1222_s1] sm:$0xff]  ;;  %v356_v1 = vld [vmem:[%s1222_s1 + $0x8] sm:$0xff]  ;;  %vm357_vm0 = vcmask 7168   ;;  %v1035_v3 = vmov 0   ;;  %vm423_vm1 = vcmask 150528   ;;  %s1232_s10 = smov (!%p336_p3, %s945_s10), 1  ;;  %v405_v23 = vlaneseq }
   0xc   : > { %v361_v2 = vld [vmem:[%s1223_s2] sm:$0xff]  ;;  %1019 = vset.pattern.permute.xlu0 %v1035_v3  ;;  %v358_v4 = vsel %vm357_vm0, %v355_v0, 0.0  ;;  %v359_v5 = vsel %vm357_vm0, %v356_v1, 0.0  ;;  %v362_v6 = vld [vmem:[%s1223_s2 + $0x8] sm:$0xff]  ;;  %733 = vmatprep.mubr.bf16.mxu0 %v1035_v3  ;;  %424 = vst.msk [vmem:[#allocation2] sm:$0xf] %vm423_vm1, %v1035_v3 }
   0xd   : > { %v363_v7 = vsel %vm357_vm0, %v361_v2, 0.0  ;;  %v360_v8 = vadd.f32 %v359_v5, %v358_v4  ;;  %v364_v9 = vsel %vm357_vm0, %v362_v6, 0.0  ;;  %v372_v17 = vld [vmem:[%s1224_s3] sm:$0xff]  ;;  %s998_s23 = smul.u32 12, %s1232_s10  ;;  %v1135_v26 = vshrl.u32 %v405_v23, 7 }
   0xe   : > { %v365_v10 = vadd.f32 %v364_v9, %v363_v7  ;;  %v376_v20 = vld [vmem:[%s1225_s4] sm:$0xff]  ;;  %vm425_vm2 = vcmask 1043864   ;;  %vm448_vm3 = vcmask 1043608   ;;  %vm449_vm4 = vcmask 1047556  }
   0xf   : > { %v367_v11 = vmul.f32 0.001953125, %v360_v8  ;;  %s340_s26 = scalar_lea.vmem %s1221_s0, %s998_s23  ;;  %v407_v31 = vsub.s32 0, %v1135_v26  ;;  %v403_v32 = vld [vmem:[%s1227_s6] sm:$0x7]  ;;  %v411_v33 = vsub.s32 1, %v1135_v26  ;;  %v415_v34 = vsub.s32 2, %v1135_v26  ;;  %vm450_vm6 = vmor %vm449_vm4, %vm448_vm3 }
  0x10   : > { %v368_v12 = vmul.f32 0.001953125, %v365_v10  ;;  %v379_v24 = vld [vmem:[%s340_s26] sm:$0xff]  ;;  %v380_v25 = vld [vmem:[%s340_s26 + $0x8] sm:$0xf]  ;;  %426 = vst.msk [vmem:[#allocation2 + $0x8] sm:$0xf] %vm425_vm2, %v1035_v3  ;;  %s345_s26 = scalar_lea.vmem %s1228_s7, %s998_s23 }
  0x11   : > { %v369_v13 = vmul.f32 %v367_v11, %v367_v11  ;;  %v381_v27 = vunpack.c.l.bf16 %v379_v24  ;;  %v382_v28 = vunpack.c.h.bf16 %v379_v24  ;;  %v383_v29 = vunpack.c.l.bf16 %v380_v25  ;;  %s952_s23 = sshll.u32 %s1232_s10, 2 }
  0x12   : > { %v408_v39 = vrot.slane %v403_v32, %v407_v31  ;;  %v412_v43 = vrot.slane %v403_v32, %v411_v33  ;;  %v416_v47 = vrot.slane %v403_v32, %v415_v34  ;;  %vm443_vm5 = vcmask 154624  }
  0x13   : > { %v370_v14 = vsub.f32 %v368_v12, %v369_v13  ;;  %vm452_vm7 = vcmask 412672   ;;  %vm457_vm8 = vcmask 257024   ;;  %v1038_v59 = vmov 0.0  }
  0x14   : > { %984 = vmatprep.subr.bf16.mxu1 %v1038_v59  ;;  %vm1045_vm9 = vmmov 0   ;;  %vm469_vm10 = vcmask 1043456   ;;  %vm590_vm11 = vcmask 736256   ;;  %vm556_vm12 = vcmask 752640  }
  0x15   : > { %v371_v15 = vmax.f32 %v370_v14, 0.0  ;;  %994 = vmatprep.mubr.msk.bf16.mxu1 %vm1045_vm9, %v1038_v59  ;;  %vm573_vm13 = vcmask 744448   ;;  %vm522_vm14 = vcmask 891904   ;;  %vm539_vm15 = vcmask 883712  }
  0x16   : > { %vm488_vm0 = vcmask 1031168   ;;  %vm505_vm1 = vcmask 900096   ;;  %vm471_vm2 = vcmask 1039360   ;;  %vm687_vm3 = vcmask 588800  }
  0x17   : > { %v373_v16 = vadd.f32 1e-05, %v371_v15  ;;  %vm815_vm4 = vcmask 3072  }
  0x19   : > { %1025 = vrsqrt.f32 %v373_v16 }
  0x26   : > { %v1026_v18 = vpop.eup %1025 }
  0x27   : > { %v375_v19 = vmul.f32 %v1026_v18, %v372_v17 }
  0x29   : > { %386 = vperm.xlu0 %1019, %v375_v19   ;;  %v377_v21 = vmul.f32 %v375_v19, %v367_v11 }
  0x2b   : > { %v378_v22 = vsub.f32 %v376_v20, %v377_v21 }
  0x2d   : > { %394 = vperm.xlu0 %1019, %v378_v22  }
  0xa4   : > { %v387_v30 = vpop.permute.xlu0 %386 }
  0xa5   : > { %v389_v35 = vmul.f32 %v387_v30, %v381_v27  ;;  %v390_v36 = vmul.f32 %v387_v30, %v382_v28  ;;  %v391_v37 = vmul.f32 %v387_v30, %v383_v29 }
  0xa8   : > { %v395_v38 = vpop.permute.xlu0 %394 }
  0xa9   : > { %v397_v40 = vadd.f32 %v395_v38, %v389_v35  ;;  %v398_v41 = vadd.f32 %v395_v38, %v390_v36  ;;  %v399_v42 = vadd.f32 %v395_v38, %v391_v37 }
  0xab   : > { %v400_v44 = vmax.f32 %v397_v40, 0.0  ;;  %v401_v45 = vmax.f32 %v398_v41, 0.0  ;;  %v402_v46 = vmax.f32 %v399_v42, 0.0 }
  0xad   : > { %v420_v48 = vmul.f32 %v408_v39, %v400_v44  ;;  %v421_v49 = vmul.f32 %v412_v43, %v401_v45  ;;  %v422_v51 = vmul.f32 %v416_v47, %v402_v46 }
  0xaf   : > { %v976_v50 = vpack.c.bf16 %v421_v49, %v420_v48  ;;  %v977_v52 = vpack.c.bf16 %v422_v51, %v422_v51 }
  0xb1   : > { %438 = vrot.lane.b32.xlu1 %v976_v50, %s1036_s29 }
  0xb5   : > { %440 = vrot.lane.b32.xlu1 %v977_v52, %s1036_s29  ;;  %s349_s29 = scalar_lea.vmem %s1229_s8, %s952_s23 }
 0x123   : > { %v439_v53 = vpop.permute.xlu1 %438 }
 0x124   : > { %v442_v54 = vrot.slane %v439_v53, 4 }
 0x126   : > { %v444_v55 = vsel %vm443_vm5, %v442_v54, %v439_v53 }
 0x127   : > { %451 = vst.msk [vmem:[#allocation2] sm:$0xff] %vm450_vm6, %v444_v55  ;;  %v441_v56 = vpop.permute.xlu1 %440 }
 0x128   : > { %v445_v57 = vsel %vm443_vm5, %v442_v54, %v441_v56 }
 0x129   : > { %453 = vst.msk [vmem:[#allocation2 + $0x8] sm:$0xf] %vm452_vm7, %v445_v57 }
 0x12e   : > { %v1149_v58 = vld [vmem:[#allocation2] sm:$0xff] }
 0x12f   : > { %583 = vrot.lane.b32.xlu0 %v1149_v58, %s1037_s11 }
 0x130   : > { %v455_v60 = vld [vmem:[#allocation2 + $0x8] sm:$0xf] }
 0x131   : > { %v580_v61 = vld [vmem:[#allocation2 + $0x8] sm:$0xf]  ;;  %458 = vst.msk [vmem:[#allocation3 + $0x8] sm:$0xf] %vm457_vm8, %v455_v60 }
 0x132   : > { %585 = vrot.lane.b32.xlu1 %v580_v61, %s1037_s11  ;;  %v546_v62 = vld [vmem:[#allocation2 + $0x8] sm:$0xf] }
 0x133   : > { %549 = vrot.lane.b32.xlu0 %v1149_v58, %s1039_s12  ;;  %v563_v63 = vld [vmem:[#allocation2 + $0x8] sm:$0xf] }
 0x134   : > { %v512_v0 = vld [vmem:[#allocation2 + $0x8] sm:$0xf] }
 0x135   : > { %v529_v1 = vld [vmem:[#allocation2 + $0x8] sm:$0xf] }
 0x136   : > { %551 = vrot.lane.b32.xlu1 %v546_v62, %s1039_s12  ;;  %v478_v2 = vld [vmem:[#allocation2 + $0x8] sm:$0xf] }
 0x137   : > { %566 = vrot.lane.b32.xlu0 %v1149_v58, %s1040_s13  ;;  %v495_v3 = vld [vmem:[#allocation2 + $0x8] sm:$0xf] }
 0x138   : > { %v460_v4 = vld [vmem:[#allocation2 + $0x8] sm:$0xf] }
 0x13a   : > { %568 = vrot.lane.b32.xlu1 %v563_v63, %s1040_s13  ;;  %s353_s13 = scalar_lea.vmem %s1230_s9, %s952_s23 }
 0x13b   : > { %515 = vrot.lane.b32.xlu0 %v1149_v58, %s1041_s14 }
 0x13e   : > { %517 = vrot.lane.b32.xlu1 %v512_v0, %s1041_s14 }
 0x13f   : > { %532 = vrot.lane.b32.xlu0 %v1149_v58, %s1042_s15 }
 0x142   : > { %534 = vrot.lane.b32.xlu1 %v529_v1, %s1042_s15 }
 0x143   : > { %481 = vrot.lane.b32.xlu0 %v1149_v58, %s1043_s16 }
 0x146   : > { %483 = vrot.lane.b32.xlu1 %v478_v2, %s1043_s16 }
 0x147   : > { %498 = vrot.lane.b32.xlu0 %v1149_v58, %s1044_s17 }
 0x14a   : > { %500 = vrot.lane.b32.xlu1 %v495_v3, %s1044_s17 }
 0x14b   : > { %463 = vrot.lane.b32.xlu0 %v1149_v58, %s1046_s18 }
 0x14e   : > { %465 = vrot.lane.b32.xlu1 %v460_v4, %s1046_s18 }
 0x1a1   : > { %v584_v5 = vpop.permute.xlu0 %583 }
 0x1a2   : > { %v587_v7 = vrot.slane %v584_v5, 4 }
 0x1a4   : > { %v586_v6 = vpop.permute.xlu1 %585 }
 0x1a5   : > { %v588_v8 = vrot.slane %v586_v6, 4  ;;  %595 = vst.msk [vmem:[#allocation3 + $0x68] sm:$0xf] %vm457_vm8, %v586_v6  ;;  %v550_v9 = vpop.permute.xlu0 %549 }
 0x1a6   : > { %v553_v13 = vrot.slane %v550_v9, 4 }
 0x1a7   : > { %v589_v10 = vsel %vm469_vm10, %v587_v7, %v588_v8 }
 0x1a8   : > { %v591_v11 = vsel %vm590_vm11, %v584_v5, %v589_v10  ;;  %v552_v12 = vpop.permute.xlu1 %551 }
 0x1a9   : > { %v554_v14 = vrot.slane %v552_v12, 4  ;;  %561 = vst.msk [vmem:[#allocation3 + $0x50] sm:$0xf] %vm457_vm8, %v552_v12  ;;  %v969_v15 = vcombine.high %v591_v11, %v591_v11  ;;  %v968_v16 = vcombine.low %v591_v11, %v591_v11  ;;  %v567_v17 = vpop.permute.xlu0 %566  ;;  %v596_v11 = vld [vmem:[%s1226_s5] sm:$0x3] }
 0x1aa   : > { %v570_v23 = vrot.slane %v567_v17, 4 }
 0x1ab   : > { %v555_v18 = vsel %vm469_vm10, %v553_v13, %v554_v14  ;;  %971 = vmatprep.subr.msk.bf16.mxu0 %vm469_vm10, %v969_v15  ;;  %v693_v19 = vsel %vm469_vm10, %v968_v16, 0  ;;  %v782_v13 = vld [vmem:[%s1227_s6] sm:$0x7] }
 0x1ac   : > { %v557_v20 = vsel %vm556_vm12, %v550_v9, %v555_v18  ;;  %v569_v21 = vpop.permute.xlu1 %568  ;;  %v1020_v22 = vld [vmem:[#allocation3 + $0x68] ss:$0 sps:$4 sm:$0xff]   ;;  %708 = vmatpush1.bf16.msra.mxu0 %v693_v19  ;;  %v791_v14 = vrot.slane %v782_v13, %v411_v33 }
 0x1ad   : > { %v571_v24 = vrot.slane %v569_v21, 4  ;;  %578 = vst.msk [vmem:[#allocation3 + $0x5c] sm:$0xf] %vm457_vm8, %v569_v21  ;;  %v516_v25 = vpop.permute.xlu0 %515  ;;  %v699_v27 = vsel %vm469_vm10, %v1020_v22, 0 }
 0x1ae   : > { %985 = vmatpush3.bf16.msra.mxu1 %v699_v27  ;;  %v519_v32 = vrot.slane %v516_v25, 4 }
 0x1af   : > { %v572_v28 = vsel %vm469_vm10, %v570_v23, %v571_v24  ;;  %986 = vmatprep.subr.bf16.mxu1 %v1038_v59 }
 0x1b0   : > { %v574_v29 = vsel %vm573_vm13, %v567_v17, %v572_v28  ;;  %v518_v30 = vpop.permute.xlu1 %517 }
 0x1b1   : > { %v520_v35 = vrot.slane %v518_v30, 4  ;;  %527 = vst.msk [vmem:[#allocation3 + $0x38] sm:$0xf] %vm457_vm8, %v518_v30  ;;  %v966_v36 = vcombine.high %v557_v20, %v574_v29  ;;  %v965_v37 = vcombine.low %v557_v20, %v574_v29  ;;  %v533_v38 = vpop.permute.xlu0 %532 }
 0x1b2   : > { %v536_v43 = vrot.slane %v533_v38, 4 }
 0x1b3   : > { %v521_v39 = vsel %vm469_vm10, %v519_v32, %v520_v35  ;;  %709 = vmatprep.subr.bf16.mxu0 %v966_v36 }
 0x1b4   : > { %v523_v40 = vsel %vm522_vm14, %v516_v25, %v521_v39  ;;  %v535_v41 = vpop.permute.xlu1 %534  ;;  %v1021_v42 = vld [vmem:[#allocation3 + $0x50] ss:$12 sps:$4 sm:$0xff]   ;;  %710 = vmatpush1.bf16.msra.mxu0 %v965_v37 }
 0x1b5   : > { %v537_v44 = vrot.slane %v535_v41, 4  ;;  %544 = vst.msk [vmem:[#allocation3 + $0x44] sm:$0xf] %vm457_vm8, %v535_v41  ;;  %v482_v45 = vpop.permute.xlu0 %481  ;;  %987 = vmatpush3.bf16.msra.mxu1 %v1021_v42 }
 0x1b6   : > { %988 = vmatprep.subr.bf16.mxu1 %v1038_v59  ;;  %v485_v49 = vrot.slane %v482_v45, 4 }
 0x1b7   : > { %v538_v46 = vsel %vm469_vm10, %v536_v43, %v537_v44 }
 0x1b8   : > { %v540_v47 = vsel %vm539_vm15, %v533_v38, %v538_v46  ;;  %v484_v48 = vpop.permute.xlu1 %483 }
 0x1b9   : > { %v486_v50 = vrot.slane %v484_v48, 4  ;;  %493 = vst.msk [vmem:[#allocation3 + $0x20] sm:$0xf] %vm457_vm8, %v484_v48  ;;  %v963_v51 = vcombine.high %v523_v40, %v540_v47  ;;  %v962_v52 = vcombine.low %v523_v40, %v540_v47  ;;  %v499_v53 = vpop.permute.xlu0 %498 }
 0x1ba   : > { %v502_v60 = vrot.slane %v499_v53, 4 }
 0x1bb   : > { %v487_v54 = vsel %vm469_vm10, %v485_v49, %v486_v50  ;;  %711 = vmatprep.subr.bf16.mxu0 %v963_v51 }
 0x1bc   : > { %v489_v55 = vsel %vm488_vm0, %v482_v45, %v487_v54  ;;  %v501_v56 = vpop.permute.xlu1 %500  ;;  %v1022_v57 = vld [vmem:[#allocation3 + $0x38] ss:$12 sps:$4 sm:$0xff]   ;;  %712 = vmatpush1.bf16.msra.mxu0 %v962_v52 }
 0x1bd   : > { %v503_v61 = vrot.slane %v501_v56, 4  ;;  %510 = vst.msk [vmem:[#allocation3 + $0x2c] sm:$0xf] %vm457_vm8, %v501_v56  ;;  %v464_v62 = vpop.permute.xlu0 %463  ;;  %989 = vmatpush3.bf16.msra.mxu1 %v1022_v57 }
 0x1be   : > { %990 = vmatprep.subr.bf16.mxu1 %v1038_v59  ;;  %v467_v2 = vrot.slane %v464_v62, 4 }
 0x1bf   : > { %v504_v63 = vsel %vm469_vm10, %v502_v60, %v503_v61 }
 0x1c0   : > { %v506_v0 = vsel %vm505_vm1, %v499_v53, %v504_v63  ;;  %v466_v1 = vpop.permute.xlu1 %465 }
 0x1c1   : > { %v468_v3 = vrot.slane %v466_v1, 4  ;;  %476 = vst.msk [vmem:[#allocation3 + $0x14] sm:$0xf] %vm457_vm8, %v466_v1  ;;  %v960_v4 = vcombine.high %v489_v55, %v506_v0  ;;  %v959_v5 = vcombine.low %v489_v55, %v506_v0 }
 0x1c3   : > { %v470_v6 = vsel %vm469_vm10, %v467_v2, %v468_v3  ;;  %713 = vmatprep.subr.bf16.mxu0 %v960_v4 }
 0x1c4   : > { %v472_v7 = vsel %vm471_vm2, %v464_v62, %v470_v6  ;;  %v1023_v8 = vld [vmem:[#allocation3 + $0x20] ss:$12 sps:$4 sm:$0xff]   ;;  %714 = vmatpush1.bf16.msra.mxu0 %v959_v5 }
 0x1c5   : > { %v957_v9 = vcombine.high %v1149_v58, %v472_v7  ;;  %v956_v10 = vcombine.low %v1149_v58, %v472_v7  ;;  %991 = vmatpush3.bf16.msra.mxu1 %v1023_v8  ;;  %v787_v58 = vrot.slane %v782_v13, %v407_v31 }
 0x1c6   : > { %992 = vmatprep.subr.bf16.mxu1 %v1038_v59  ;;  %v795_v59 = vrot.slane %v782_v13, %v415_v34 }
 0x1c7   : > { %715 = vmatprep.subr.bf16.mxu0 %v957_v9 }
 0x1c8   : > { %v1024_v12 = vld [vmem:[#allocation3 + $0x8] ss:$12 sps:$4 sm:$0xff]   ;;  %716 = vmatpush1.bf16.msra.mxu0 %v956_v10 }
 0x1c9   : > { %993 = vmatpush3.bf16.msra.mxu1 %v1024_v12 }
 0x1cb   : > { %972 = vmatmul.mubr.msk.bf16.vlgmr.msra.gmra.mxu0 %vm687_vm3, %v596_v11 }
 0x1cc   : > { %995 = vmatmul.mubr.msk.bf16.vlgmr.msra.gmra.mxu1 %vm687_vm3, %v596_v11 }
 0x28b   : > { %v735_v15 = vpop.f32.mrf.mxu0 }
 0x28c   : > { %v799_v16 = vmul.f32 %v787_v58, %v735_v15  ;;  %v776_v17 = vpop.f32.mrf.mxu1 }
 0x28d   : > { %v737_v18 = vpop.f32.mrf.mxu0  ;;  %v801_v19 = vmul.f32 %v795_v59, %v776_v17 }
 0x28e   : > { %v817_v20 = vmul.f32 %v799_v16, %v799_v16  ;;  %v800_v21 = vmul.f32 %v791_v14, %v737_v18  ;;  %v996_v22 = vpop.f32.mrf.mxu1  ;;  %v808_v23 = vsel %vm469_vm10, %v799_v16, 0.0 }
 0x28f   : > { %v739_v31 = vpop.f32.mrf.mxu0  ;;  %807 = vst.msk [vmem:[%s345_s26 + $0x8] sm:$0xf] %vm457_vm8, %v801_v19  ;;  %v811_v24 = vsel %vm457_vm8, %v801_v19, 0.0  ;;  %v819_v29 = vmul.f32 %v801_v19, %v801_v19 }
 0x290   : > { %v804_v26 = vcombine.low %v799_v16, %v800_v21  ;;  %v818_v33 = vmul.f32 %v800_v21, %v800_v21  ;;  %v809_v34 = vsel %vm469_vm10, %v800_v21, 0.0  ;;  %v779_v25 = vpop.f32.mrf.mxu1  ;;  %v820_v30 = vsel %vm469_vm10, %v817_v20, 0.0 }
 0x291   : > { %v740_v27 = vpop.f32.mrf.mxu0  ;;  %v810_v28 = vadd.f32 %v809_v34, %v808_v23  ;;  %v823_v38 = vsel %vm457_vm8, %v819_v29, 0.0 }
 0x292   : > { %806 = vst [vmem:[%s345_s26] sm:$0xff] %v804_v26  ;;  %v821_v32 = vsel %vm469_vm10, %v818_v33, 0.0  ;;  %v997_v35 = vpop.f32.mrf.mxu1 }
 0x293   : > { %v812_v36 = vadd.f32 %v811_v24, %v810_v28  ;;  %v822_v37 = vadd.f32 %v821_v32, %v820_v30 }
 0x295   : > { %813 = vadd.xlane.f32.xlu0 %v812_v36  ;;  %v824_v39 = vadd.f32 %v823_v38, %v822_v37 }
 0x297   : > { %825 = vadd.xlane.f32.xlu1 %v824_v39 }
 0x31e   : > { %v814_v40 = vpop.xlane.xlu0 %813 }
 0x31f   : > { %816 = vst.msk [vmem:[%s349_s29] sm:$0xf] %vm815_vm4, %v814_v40 }
 0x320   : > { %v826_v41 = vpop.xlane.xlu1 %825 }
 0x321   : > { %827 = vst.msk [vmem:[%s353_s13] sm:$0xf] %vm815_vm4, %v826_v41 }
 0x322 PF: > { %s20_s30 = sadd.s32 1, %s1033_s30  }
 0x323   : > { %p17_p4 = scmp.ge.s32.totalorder %s20_s30, 4  }
 0x325   :  { %19 = sbr.rel (!%p17_p4) target bundleno = 1 (0x1), region = 102 }

</bundles_post_ra>
